<compile_context>
chip_gen: v7x
topology: tpu7x:2x2x1
jax: 0.10.0
libtpu: 0.0.40
codegen_flags: <defaults>
</compile_context>

<pallas_src>
import math

import jax
import jax.numpy as jnp
from jax.experimental import pallas as pl
from jax.experimental.pallas import tpu as pltpu


def _round_up(x, m):
    return (x + m - 1) // m * m


# ------------------------------ Fused kernel ---------------------------------
# One (row-block i, K-block k) step of:
#   out_i = (G_i @ x) @ Wc + rowsum(G_i)[:, None] * bias
def _fused_kernel(g_ref, x_ref, wc_ref, b_ref, o_ref, acc_ref, rs_ref):
    k = pl.program_id(1)

    @pl.when(k == 0)
    def _():
        acc_ref[...] = jnp.zeros_like(acc_ref)
        rs_ref[...] = jnp.zeros_like(rs_ref)

    g = g_ref[...]                                              # (tm, tk) bf16
    # Accumulate G @ x on the MXU (bf16 inputs, f32 accumulation).
    acc_ref[...] += jnp.dot(g, x_ref[...], preferred_element_type=jnp.float32)
    # Accumulate rowsum(G) for the bias term (XLU reduce; off the MXU path).
    rs_ref[...] += jnp.sum(g.astype(jnp.float32), axis=-1, keepdims=True)

    @pl.when(k == pl.num_programs(1) - 1)
    def _():
        gx = acc_ref[...].astype(jnp.bfloat16)                  # one quantization
        out = jnp.dot(gx, wc_ref[...], preferred_element_type=jnp.float32)
        out = out + rs_ref[...] * b_ref[...]
        o_ref[...] = out.astype(o_ref.dtype)                    # final dtype store


# --------------------------------- Wrapper -----------------------------------
def hgnn_t_conv_v2(x, G, weight_parameter, weight_t_parameter, bias,
                   *, embedding_dim, time_slot):
    """Forward of HGNN_t_conv_v2:  G @ (x @ w @ dw @ w_t + bias)."""
    f32 = jnp.float32
    E, T = embedding_dim, time_slot
    D = T * E
    N, in_ft = x.shape
    assert in_ft == D, "in_ft must equal time_slot * embedding_dim"
    assert G.shape == (N, N)

    # --- structural constants (identical to the numpy construction in __init__)
    u = jnp.kron(jnp.eye(T, dtype=f32), jnp.ones((1, E), dtype=f32))       # (T, D)
    idx = jnp.arange(D)
    diff = idx[None, :] - idx[:, None]
    v = ((diff >= 0) & (diff % E == 0)).astype(f32)                        # (D, D)
    u1 = jnp.kron(jnp.ones((T, 1), dtype=f32), jnp.eye(E, dtype=f32))      # (D, E)
    v1 = (idx[:, None] // E == idx[None, :] // E).astype(f32)              # (D, D)
    dw_diag = 1.0 / jnp.repeat(jnp.arange(1, T + 1, dtype=f32), E)         # (D,)

    # --- expand learned parameters, then pre-combine the whole feature side:
    #     Wc = w @ diag(dw) @ w_t   (tiny DxD host-side preprocessing)
    w = (u.T @ weight_parameter.astype(f32) @ u) * v                       # (D, D)
    w_t = (u1 @ weight_t_parameter.astype(f32) @ u1.T) * v1                # (D, D)
    wc = (w * dw_diag[None, :]) @ w_t                                      # (D, D)

    # --- padding / tiling -----------------------------------------------------
    Dp = _round_up(D, 128)                # lane-dense feature dim
    Np = _round_up(N, 128)                # pad N only to 128 (not to tm)
    # Row tile: prefer 256 (fills v6e/v7x MXU M) only if it leaves >= 4 blocks
    # (even split across v7x's two TCs); otherwise 128 (fully feeds v5e's MXU).
    tm = 256 if (Np % 256 == 0 and Np // 256 >= 4) else 128
    # K (contraction over N) tile: bounded so VMEM stays small as N grows.
    tk = 512 if Np % 512 == 0 else (256 if Np % 256 == 0 else 128)
    n_rows, n_k = Np // tm, Np // tk

    def pad2(a, rows, cols, dtype):
        a = a.astype(dtype)
        return jnp.pad(a, ((0, rows - a.shape[0]), (0, cols - a.shape[1])))

    # Zero padding keeps the contraction exact: padded G columns / x rows are
    # zero, and padded G rows have rowsum 0 so padded output rows stay zero.
    x_p = pad2(x, Np, Dp, jnp.bfloat16)
    g_p = pad2(G, Np, Np, jnp.bfloat16)
    wc_p = pad2(wc, Dp, Dp, jnp.bfloat16)
    b_p = jnp.pad(bias.astype(f32), (0, Dp - D)).reshape(1, Dp)
    out_dtype = x.dtype

    def build_call(single_buffer_invariants):
        if single_buffer_invariants:
            # Invariant operands: block index never changes -> single buffer
            # (saves the pointless second pipeline buffer in VMEM).
            wc_spec = pl.BlockSpec((Dp, Dp), lambda i, k: (0, 0),
                                   pipeline_mode=pl.Buffered(1))
            b_spec = pl.BlockSpec((1, Dp), lambda i, k: (0, 0),
                                  pipeline_mode=pl.Buffered(1))
        else:
            wc_spec = pl.BlockSpec((Dp, Dp), lambda i, k: (0, 0))
            b_spec = pl.BlockSpec((1, Dp), lambda i, k: (0, 0))
        return pl.pallas_call(
            _fused_kernel,
            out_shape=jax.ShapeDtypeStruct((Np, Dp), out_dtype),
            grid=(n_rows, n_k),
            in_specs=[
                pl.BlockSpec((tm, tk), lambda i, k: (i, k)),   # G tile (pipelined)
                pl.BlockSpec((tk, Dp), lambda i, k: (k, 0)),   # x K-tile (pipelined)
                wc_spec,                                       # Wc (resident)
                b_spec,                                        # bias (resident)
            ],
            out_specs=pl.BlockSpec((tm, Dp), lambda i, k: (i, 0)),
            scratch_shapes=[
                pltpu.VMEM((tm, Dp), jnp.float32),             # G@x accumulator
                pltpu.VMEM((tm, 1), jnp.float32),              # rowsum(G) accumulator
            ],
            compiler_params=pltpu.CompilerParams(
                dimension_semantics=("parallel", "arbitrary"),
                vmem_limit_bytes=32 * 1024 * 1024,
            ),
        )

    try:
        out_p = build_call(True)(g_p, x_p, wc_p, b_p)
    except Exception:
        # JAX build without single-buffer pipeline_mode support: fall back to
        # default double-buffered invariant operands (small extra VMEM only).
        out_p = build_call(False)(g_p, x_p, wc_p, b_p)

    return out_p[:N, :D]


# ------------------------------ f32 reference --------------------------------
def hgnn_t_conv_v2_reference(x, G, weight_parameter, weight_t_parameter, bias,
                             *, embedding_dim, time_slot):
    f32 = jnp.float32
    E, T = embedding_dim, time_slot
    D = T * E
    u = jnp.kron(jnp.eye(T, dtype=f32), jnp.ones((1, E), dtype=f32))
    idx = jnp.arange(D)
    diff = idx[None, :] - idx[:, None]
    v = ((diff >= 0) & (diff % E == 0)).astype(f32)
    u1 = jnp.kron(jnp.ones((T, 1), dtype=f32), jnp.eye(E, dtype=f32))
    v1 = (idx[:, None] // E == idx[None, :] // E).astype(f32)
    dw = jnp.diag(1.0 / jnp.repeat(jnp.arange(1, T + 1, dtype=f32), E))
    w = (u.T @ weight_parameter @ u) * v
    w_t = (u1 @ weight_t_parameter @ u1.T) * v1
    h = x @ w @ dw @ w_t + bias
    return G @ h


if __name__ == "__main__":
    # Small shapes consistent with the module: embedding_dim=4, time_slot=32
    # -> in_ft = D = 128 (lane-dense), N = 512 nodes (4 row blocks of 128).
    E, T = 4, 32
    D = E * T
    N = 512

    key = jax.random.PRNGKey(0)
    k_x, k_g, k_w, k_wt, k_b = jax.random.split(key, 5)

    # reset_parameters(): uniform(-stdv, stdv), stdv = 1/sqrt(time_slot)
    stdv = 1.0 / math.sqrt(T)
    weight_parameter = jax.random.uniform(k_w, (T, T), jnp.float32, -stdv, stdv)
    weight_t_parameter = jax.random.uniform(k_wt, (E, E), jnp.float32, -stdv, stdv)
    bias = jax.random.uniform(k_b, (D,), jnp.float32, -stdv, stdv)

    x = jax.random.normal(k_x, (N, D), jnp.float32)
    G = jax.random.normal(k_g, (N, N), jnp.float32)

    out = hgnn_t_conv_v2(x, G, weight_parameter, weight_t_parameter, bias,
                         embedding_dim=E, time_slot=T)
    out = jax.block_until_ready(out)
    assert out.shape == (N, D)

    ref = hgnn_t_conv_v2_reference(x, G, weight_parameter, weight_t_parameter,
                                   bias, embedding_dim=E, time_slot=T)
    # bf16 MXU inputs with f32 accumulation: expected normalized max error
    # ~1e-3..1e-2; threshold leaves margin.
    err = jnp.max(jnp.abs(out - ref)) / (jnp.max(jnp.abs(ref)) + 1e-6)
    assert float(err) < 3e-2, f"mismatch vs f32 reference: normalized err={float(err)}"

    print("KERNEL_OK")
</pallas_src>

<mosaic_0001>
module attributes {stable_mosaic.version = 11 : i64} {
  func.func @_fused_kernel(%arg0: i32, %arg1: i32, %arg2: memref<128x512xbf16, #tpu.memory_space<vmem>>, %arg3: memref<512x128xbf16, #tpu.memory_space<vmem>>, %arg4: memref<128x128xbf16, #tpu.memory_space<vmem>>, %arg5: memref<1x128xf32, #tpu.memory_space<vmem>>, %arg6: memref<128x128xf32, #tpu.memory_space<vmem>>, %arg7: memref<128x128xf32, #tpu.memory_space<vmem>>, %arg8: memref<128x1xf32, #tpu.memory_space<vmem>>) attributes {dimension_semantics = [#tpu.dimension_semantics<parallel>, #tpu.dimension_semantics<arbitrary>], iteration_bounds = array<i64: 4, 1>, scalar_prefetch = 0 : i64, scratch_operands = 2 : i64, tpu.core_type = #tpu.core_type<tc>, window_params = [{transform_indices = @transform_0, window_bounds = array<i64: 128, 512>}, {transform_indices = @transform_1, window_bounds = array<i64: 512, 128>}, {pipeline_mode = #tpu.pipeline_mode<synchronous>, transform_indices = @transform_2, window_bounds = array<i64: 128, 128>}, {pipeline_mode = #tpu.pipeline_mode<synchronous>, transform_indices = @transform_3, window_bounds = array<i64: 1, 128>}, {transform_indices = @transform_4, window_bounds = array<i64: 128, 128>}]} {
    %c0_i32 = arith.constant 0 : i32
    %0 = arith.cmpi eq, %arg1, %c0_i32 : i32
    %1 = arith.extui %0 : i1 to i32
    %c0_i32_0 = arith.constant 0 : i32
    %2 = arith.cmpi ne, %1, %c0_i32_0 : i32
    scf.if %2 {
      %cst_15 = arith.constant 0.000000e+00 : f32
      %18 = vector.broadcast %cst_15 : f32 to vector<128x128xf32>
      %c0_16 = arith.constant 0 : index
      %c0_17 = arith.constant 0 : index
      %19 = vector.load %arg7[%c0_16, %c0_17] : memref<128x128xf32, #tpu.memory_space<vmem>>, vector<128x128xf32>
      tpu.vector_store %arg7[%c0_16, %c0_17], %18 {strides = array<i32>} : memref<128x128xf32, #tpu.memory_space<vmem>>, vector<128x128xf32>,
      %cst_18 = arith.constant 0.000000e+00 : f32
      %20 = vector.broadcast %cst_18 : f32 to vector<128x1xf32>
      %c0_19 = arith.constant 0 : index
      %c0_20 = arith.constant 0 : index
      %21 = vector.load %arg8[%c0_19, %c0_20] : memref<128x1xf32, #tpu.memory_space<vmem>>, vector<128x1xf32>
      tpu.vector_store %arg8[%c0_19, %c0_20], %20 {strides = array<i32>} : memref<128x1xf32, #tpu.memory_space<vmem>>, vector<128x1xf32>,
    } else {
    }
    %c0 = arith.constant 0 : index
    %c0_1 = arith.constant 0 : index
    %3 = vector.load %arg2[%c0, %c0_1] : memref<128x512xbf16, #tpu.memory_space<vmem>>, vector<128x512xbf16>
    %c0_2 = arith.constant 0 : index
    %c0_3 = arith.constant 0 : index
    %4 = vector.load %arg7[%c0_2, %c0_3] : memref<128x128xf32, #tpu.memory_space<vmem>>, vector<128x128xf32>
    %c0_4 = arith.constant 0 : index
    %c0_5 = arith.constant 0 : index
    %5 = vector.load %arg3[%c0_4, %c0_5] : memref<512x128xbf16, #tpu.memory_space<vmem>>, vector<512x128xbf16>
    %cst = arith.constant dense<0.000000e+00> : vector<128x128xf32>
    %6 = tpu.matmul %3, %5, %cst {dimension_numbers = #tpu.dot_dimension_numbers<[1], [0], [0], [1], [0, 0, 1, 1], [], []>} : vector<128x512xbf16>, vector<512x128xbf16>, vector<128x128xf32> -> vector<128x128xf32>
    %7 = arith.addf %4, %6 : vector<128x128xf32>
    %c0_6 = arith.constant 0 : index
    %c0_7 = arith.constant 0 : index
    %8 = vector.load %arg7[%c0_6, %c0_7] : memref<128x128xf32, #tpu.memory_space<vmem>>, vector<128x128xf32>
    tpu.vector_store %arg7[%c0_6, %c0_7], %7 {strides = array<i32>} : memref<128x128xf32, #tpu.memory_space<vmem>>, vector<128x128xf32>,
    %c0_8 = arith.constant 0 : index
    %c0_9 = arith.constant 0 : index
    %9 = vector.load %arg8[%c0_8, %c0_9] : memref<128x1xf32, #tpu.memory_space<vmem>>, vector<128x1xf32>
    %10 = arith.extf %3 : vector<128x512xbf16> to vector<128x512xf32>
    %cst_10 = arith.constant dense<0.000000e+00> : vector<128xf32>
    %11 = vector.multi_reduction <add>, %10, %cst_10 [1] : vector<128x512xf32> to vector<128xf32>
    %12 = vector.shape_cast %11 : vector<128xf32> to vector<128x1xf32>
    %13 = arith.addf %9, %12 : vector<128x1xf32>
    %c0_11 = arith.constant 0 : index
    %c0_12 = arith.constant 0 : index
    %14 = vector.load %arg8[%c0_11, %c0_12] : memref<128x1xf32, #tpu.memory_space<vmem>>, vector<128x1xf32>
    tpu.vector_store %arg8[%c0_11, %c0_12], %13 {strides = array<i32>} : memref<128x1xf32, #tpu.memory_space<vmem>>, vector<128x1xf32>,
    %c0_i32_13 = arith.constant 0 : i32
    %15 = arith.cmpi eq, %arg1, %c0_i32_13 : i32
    %16 = arith.extui %15 : i1 to i32
    %c0_i32_14 = arith.constant 0 : i32
    %17 = arith.cmpi ne, %16, %c0_i32_14 : i32
    scf.if %17 {
      %c0_15 = arith.constant 0 : index
      %c0_16 = arith.constant 0 : index
      %18 = vector.load %arg7[%c0_15, %c0_16] : memref<128x128xf32, #tpu.memory_space<vmem>>, vector<128x128xf32>
      %19 = arith.truncf %18 : vector<128x128xf32> to vector<128x128xbf16>
      %c0_17 = arith.constant 0 : index
      %c0_18 = arith.constant 0 : index
      %20 = vector.load %arg4[%c0_17, %c0_18] : memref<128x128xbf16, #tpu.memory_space<vmem>>, vector<128x128xbf16>
      %cst_19 = arith.constant dense<0.000000e+00> : vector<128x128xf32>
      %21 = tpu.matmul %19, %20, %cst_19 {dimension_numbers = #tpu.dot_dimension_numbers<[1], [0], [0], [1], [0, 0, 1, 1], [], []>} : vector<128x128xbf16>, vector<128x128xbf16>, vector<128x128xf32> -> vector<128x128xf32>
      %c0_20 = arith.constant 0 : index
      %c0_21 = arith.constant 0 : index
      %22 = vector.load %arg8[%c0_20, %c0_21] : memref<128x1xf32, #tpu.memory_space<vmem>>, vector<128x1xf32>
      %c0_22 = arith.constant 0 : index
      %c0_23 = arith.constant 0 : index
      %23 = vector.load %arg5[%c0_22, %c0_23] : memref<1x128xf32, #tpu.memory_space<vmem>>, vector<1x128xf32>
      %24 = vector.broadcast %22 : vector<128x1xf32> to vector<128x128xf32>
      %25 = vector.broadcast %23 : vector<1x128xf32> to vector<128x128xf32>
      %26 = arith.mulf %24, %25 : vector<128x128xf32>
      %27 = arith.addf %21, %26 : vector<128x128xf32>
      %c0_24 = arith.constant 0 : index
      %c0_25 = arith.constant 0 : index
      %28 = vector.load %arg6[%c0_24, %c0_25] : memref<128x128xf32, #tpu.memory_space<vmem>>, vector<128x128xf32>
      tpu.vector_store %arg6[%c0_24, %c0_25], %27 {strides = array<i32>} : memref<128x128xf32, #tpu.memory_space<vmem>>, vector<128x128xf32>,
    } else {
    }
    return
  }
  func.func @transform_0(%arg0: i32, %arg1: i32) -> (i32, i32) {
    %c0_i32 = arith.constant 0 : i32
    return %arg0, %arg1 : i32, i32
  }
  func.func @transform_1(%arg0: i32, %arg1: i32) -> (i32, i32) {
    %c0_i32 = arith.constant 0 : i32
    %c0_i32_0 = arith.constant 0 : i32
    return %arg1, %c0_i32 : i32, i32
  }
  func.func @transform_2(%arg0: i32, %arg1: i32) -> (i32, i32) {
    %c0_i32 = arith.constant 0 : i32
    %c0_i32_0 = arith.constant 0 : i32
    %c0_i32_1 = arith.constant 0 : i32
    return %c0_i32, %c0_i32_0 : i32, i32
  }
  func.func @transform_3(%arg0: i32, %arg1: i32) -> (i32, i32) {
    %c0_i32 = arith.constant 0 : i32
    %c0_i32_0 = arith.constant 0 : i32
    %c0_i32_1 = arith.constant 0 : i32
    return %c0_i32, %c0_i32_0 : i32, i32
  }
  func.func @transform_4(%arg0: i32, %arg1: i32) -> (i32, i32) {
    %c0_i32 = arith.constant 0 : i32
    %c0_i32_0 = arith.constant 0 : i32
    return %arg0, %c0_i32 : i32, i32
  }
}

module attributes {stable_mosaic.version = 11 : i64} {
  func.func @_fused_kernel(%arg0: i32, %arg1: i32, %arg2: memref<128x512xbf16, #tpu.memory_space<vmem>>, %arg3: memref<512x128xbf16, #tpu.memory_space<vmem>>, %arg4: memref<128x128xbf16, #tpu.memory_space<vmem>>, %arg5: memref<1x128xf32, #tpu.memory_space<vmem>>, %arg6: memref<128x128xf32, #tpu.memory_space<vmem>>, %arg7: memref<128x128xf32, #tpu.memory_space<vmem>>, %arg8: memref<128x1xf32, #tpu.memory_space<vmem>>) attributes {dimension_semantics = [#tpu.dimension_semantics<parallel>, #tpu.dimension_semantics<arbitrary>], iteration_bounds = array<i64: 4, 1>, scalar_prefetch = 0 : i64, scratch_operands = 2 : i64, tpu.core_type = #tpu.core_type<tc>, window_params = [{transform_indices = @transform_0, window_bounds = array<i64: 128, 512>}, {transform_indices = @transform_1, window_bounds = array<i64: 512, 128>}, {pipeline_mode = #tpu.pipeline_mode<synchronous>, transform_indices = @transform_2, window_bounds = array<i64: 128, 128>}, {pipeline_mode = #tpu.pipeline_mode<synchronous>, transform_indices = @transform_3, window_bounds = array<i64: 1, 128>}, {transform_indices = @transform_4, window_bounds = array<i64: 128, 128>}]} {
    %c0_i32 = arith.constant 0 : i32
    %0 = arith.cmpi eq, %arg1, %c0_i32 : i32
    %1 = arith.extui %0 : i1 to i32
    %c0_i32_0 = arith.constant 0 : i32
    %2 = arith.cmpi ne, %1, %c0_i32_0 : i32
    scf.if %2 {
      %cst_15 = arith.constant 0.000000e+00 : f32
      %18 = vector.broadcast %cst_15 : f32 to vector<128x128xf32>
      %c0_16 = arith.constant 0 : index
      %c0_17 = arith.constant 0 : index
      %19 = vector.load %arg7[%c0_16, %c0_17] : memref<128x128xf32, #tpu.memory_space<vmem>>, vector<128x128xf32>
      tpu.vector_store %arg7[%c0_16, %c0_17], %18 {strides = array<i32>} : memref<128x128xf32, #tpu.memory_space<vmem>>, vector<128x128xf32>,
      %cst_18 = arith.constant 0.000000e+00 : f32
      %20 = vector.broadcast %cst_18 : f32 to vector<128x1xf32>
      %c0_19 = arith.constant 0 : index
      %c0_20 = arith.constant 0 : index
      %21 = vector.load %arg8[%c0_19, %c0_20] : memref<128x1xf32, #tpu.memory_space<vmem>>, vector<128x1xf32>
      tpu.vector_store %arg8[%c0_19, %c0_20], %20 {strides = array<i32>} : memref<128x1xf32, #tpu.memory_space<vmem>>, vector<128x1xf32>,
    } else {
    }
    %c0 = arith.constant 0 : index
    %c0_1 = arith.constant 0 : index
    %3 = vector.load %arg2[%c0, %c0_1] : memref<128x512xbf16, #tpu.memory_space<vmem>>, vector<128x512xbf16>
    %c0_2 = arith.constant 0 : index
    %c0_3 = arith.constant 0 : index
    %4 = vector.load %arg7[%c0_2, %c0_3] : memref<128x128xf32, #tpu.memory_space<vmem>>, vector<128x128xf32>
    %c0_4 = arith.constant 0 : index
    %c0_5 = arith.constant 0 : index
    %5 = vector.load %arg3[%c0_4, %c0_5] : memref<512x128xbf16, #tpu.memory_space<vmem>>, vector<512x128xbf16>
    %cst = arith.constant dense<0.000000e+00> : vector<128x128xf32>
    %6 = tpu.matmul %3, %5, %cst {dimension_numbers = #tpu.dot_dimension_numbers<[1], [0], [0], [1], [0, 0, 1, 1], [], []>} : vector<128x512xbf16>, vector<512x128xbf16>, vector<128x128xf32> -> vector<128x128xf32>
    %7 = arith.addf %4, %6 : vector<128x128xf32>
    %c0_6 = arith.constant 0 : index
    %c0_7 = arith.constant 0 : index
    %8 = vector.load %arg7[%c0_6, %c0_7] : memref<128x128xf32, #tpu.memory_space<vmem>>, vector<128x128xf32>
    tpu.vector_store %arg7[%c0_6, %c0_7], %7 {strides = array<i32>} : memref<128x128xf32, #tpu.memory_space<vmem>>, vector<128x128xf32>,
    %c0_8 = arith.constant 0 : index
    %c0_9 = arith.constant 0 : index
    %9 = vector.load %arg8[%c0_8, %c0_9] : memref<128x1xf32, #tpu.memory_space<vmem>>, vector<128x1xf32>
    %10 = arith.extf %3 : vector<128x512xbf16> to vector<128x512xf32>
    %cst_10 = arith.constant dense<0.000000e+00> : vector<128xf32>
    %11 = vector.multi_reduction <add>, %10, %cst_10 [1] : vector<128x512xf32> to vector<128xf32>
    %12 = vector.shape_cast %11 : vector<128xf32> to vector<128x1xf32>
    %13 = arith.addf %9, %12 : vector<128x1xf32>
    %c0_11 = arith.constant 0 : index
    %c0_12 = arith.constant 0 : index
    %14 = vector.load %arg8[%c0_11, %c0_12] : memref<128x1xf32, #tpu.memory_space<vmem>>, vector<128x1xf32>
    tpu.vector_store %arg8[%c0_11, %c0_12], %13 {strides = array<i32>} : memref<128x1xf32, #tpu.memory_space<vmem>>, vector<128x1xf32>,
    %c0_i32_13 = arith.constant 0 : i32
    %15 = arith.cmpi eq, %arg1, %c0_i32_13 : i32
    %16 = arith.extui %15 : i1 to i32
    %c0_i32_14 = arith.constant 0 : i32
    %17 = arith.cmpi ne, %16, %c0_i32_14 : i32
    scf.if %17 {
      %c0_15 = arith.constant 0 : index
      %c0_16 = arith.constant 0 : index
      %18 = vector.load %arg7[%c0_15, %c0_16] : memref<128x128xf32, #tpu.memory_space<vmem>>, vector<128x128xf32>
      %19 = arith.truncf %18 : vector<128x128xf32> to vector<128x128xbf16>
      %c0_17 = arith.constant 0 : index
      %c0_18 = arith.constant 0 : index
      %20 = vector.load %arg4[%c0_17, %c0_18] : memref<128x128xbf16, #tpu.memory_space<vmem>>, vector<128x128xbf16>
      %cst_19 = arith.constant dense<0.000000e+00> : vector<128x128xf32>
      %21 = tpu.matmul %19, %20, %cst_19 {dimension_numbers = #tpu.dot_dimension_numbers<[1], [0], [0], [1], [0, 0, 1, 1], [], []>} : vector<128x128xbf16>, vector<128x128xbf16>, vector<128x128xf32> -> vector<128x128xf32>
      %c0_20 = arith.constant 0 : index
      %c0_21 = arith.constant 0 : index
      %22 = vector.load %arg8[%c0_20, %c0_21] : memref<128x1xf32, #tpu.memory_space<vmem>>, vector<128x1xf32>
      %c0_22 = arith.constant 0 : index
      %c0_23 = arith.constant 0 : index
      %23 = vector.load %arg5[%c0_22, %c0_23] : memref<1x128xf32, #tpu.memory_space<vmem>>, vector<1x128xf32>
      %24 = vector.broadcast %22 : vector<128x1xf32> to vector<128x128xf32>
      %25 = vector.broadcast %23 : vector<1x128xf32> to vector<128x128xf32>
      %26 = arith.mulf %24, %25 : vector<128x128xf32>
      %27 = arith.addf %21, %26 : vector<128x128xf32>
      %c0_24 = arith.constant 0 : index
      %c0_25 = arith.constant 0 : index
      %28 = vector.load %arg6[%c0_24, %c0_25] : memref<128x128xf32, #tpu.memory_space<vmem>>, vector<128x128xf32>
      tpu.vector_store %arg6[%c0_24, %c0_25], %27 {strides = array<i32>} : memref<128x128xf32, #tpu.memory_space<vmem>>, vector<128x128xf32>,
    } else {
    }
    return
  }
  func.func @transform_0(%arg0: i32, %arg1: i32) -> (i32, i32) {
    %c0_i32 = arith.constant 0 : i32
    return %arg0, %arg1 : i32, i32
  }
  func.func @transform_1(%arg0: i32, %arg1: i32) -> (i32, i32) {
    %c0_i32 = arith.constant 0 : i32
    %c0_i32_0 = arith.constant 0 : i32
    return %arg1, %c0_i32 : i32, i32
  }
  func.func @transform_2(%arg0: i32, %arg1: i32) -> (i32, i32) {
    %c0_i32 = arith.constant 0 : i32
    %c0_i32_0 = arith.constant 0 : i32
    %c0_i32_1 = arith.constant 0 : i32
    return %c0_i32, %c0_i32_0 : i32, i32
  }
  func.func @transform_3(%arg0: i32, %arg1: i32) -> (i32, i32) {
    %c0_i32 = arith.constant 0 : i32
    %c0_i32_0 = arith.constant 0 : i32
    %c0_i32_1 = arith.constant 0 : i32
    return %c0_i32, %c0_i32_0 : i32, i32
  }
  func.func @transform_4(%arg0: i32, %arg1: i32) -> (i32, i32) {
    %c0_i32 = arith.constant 0 : i32
    %c0_i32_0 = arith.constant 0 : i32
    return %arg0, %c0_i32 : i32, i32
  }
}

</mosaic_0001>

<bundles_post_ra>
// kernel: tpu_custom_call.1
= control target key start
LH: loop header
LB: loop body
LE: loop exit
PB: predicated region body
PF: predicated region fallthrough
CT: control target
= control target key end

     0   :  { %9 = vsyncpa [#allocation5], 0  ;;  %s2834_s0 = inlined_call_operand.hbm [shape: bf16[512,512], index: 0, kind: input, shape index: {}]   ;;  %s2835_s1 = inlined_call_operand.hbm [shape: bf16[512,128], index: 1, kind: input, shape index: {}]   ;;  %s2836_s2 = inlined_call_operand.hbm [shape: bf16[128,128], index: 2, kind: input, shape index: {}]   ;;  %s2837_s3 = inlined_call_operand.vmem [shape: f32[1,128], index: 3, kind: input, shape index: {}]   ;;  %s2838_s4 = inlined_call_operand.hbm [shape: f32[512,128], index: 4, kind: output, shape index: {}]  }
   0x1   :  { %11 = vsyncpa [#allocation5 + $0x1], 0 }
   0x2   :  { %12 = vsyncpa [#allocation8], 0 }
   0x3   :  { %13 = vsyncpa [#allocation6], 0 }
   0x4   :  { %15 = vsyncpa [#allocation6 + $0x1], 0  ;;  %s2301_s15 = smov 0   ;;  %s2303_s16 = smov 0  }
   0x5   :  { %s2305_s17 = smov 0   ;;  %s2307_s18 = smov 0  }
   0x6   :  { %s2309_s19 = smov 0   ;;  %s2311_s20 = smov 0  }
   0x7 LB: > { %s1637_s21 = sadd.s32 4294967295, %s2262_s20   ;;  %s1638_s22 = sadd.s32 4294967294, %s2262_s20   ;;  %s2262_s20 = sphi %s2311_s20, %s21_s20   ;;  %s2258_s19 = sphi %s2309_s19, %s2860_s19   ;;  %s2254_s18 = sphi %s2307_s18, %s2859_s18   ;;  %s2250_s17 = sphi %s2305_s17, %s2858_s17   ;;  %s2246_s16 = sphi %s2303_s16, %s2857_s16   ;;  %s2242_s15 = sphi %s2301_s15, %s2856_s15  }
   0x8   : > { %p55_p0 = scmp.ne.s32.totalorder %s2246_s16, %s2242_s15  ;;  %p2335_p1 = scmp.eq.s32.totalorder %s1637_s21, 0 }
   0x9   : > { %p2339_p2 = scmp.eq.s32.totalorder %s1637_s21, 3  ;;  %p153_p3 = scmp.eq.s32.totalorder %s1638_s22, 3 }
   0xa   : > { %s2843_s23 = scalar_select %p2335_p1, 1, 0 }
   0xb   : > { %s2844_s24 = scalar_select %p2339_p2, 1, 0 }
   0xc   : > { %p2345_p4 = por %p2335_p1, %p55_p0  ;;  %p1639_p5 = scmp.ge.s32.totalorder %s2262_s20, 1 }
   0xd   : > { %p2350_p6 = por %p153_p3, %p55_p0  ;;  %p160_p7 = scmp.lt.s32.totalorder %s2262_s20, 5 }
   0xe   : > { %s2845_s25 = scalar_select %p2345_p4, 1, 0 }
   0xf   : > { %s2846_s26 = scalar_select %p2350_p6, 1, 0 }
  0x10   : > { %p2355_p8 = pnand %p1639_p5, %p160_p7  ;;  %s2264_s28 = smov [#allocation7]  }
  0x11   : > { %s175_s29 = sshll.u32 %s2264_s28, 4  ;;  %s2265_s5 = smov [#allocation9]   ;;  %s176_s29 = int_to_ptr.vmem [resolvable:$true] %s175_s29 }
  0x12   : > { %s2847_s27 = scalar_select %p2355_p8, 1, 0 }
  0x13   : > { %p1937_p9 = pneg %p2355_p8  ;;  %s188_s6 = sshll.u32 %s2265_s5, 4  ;;  %s2367_s6 = int_to_ptr.vmem [resolvable:$true] %s188_s6 }
  0x14   : > { %s2090_s9 = scalar_lea.hbm %s2835_s1, 4096 }
  0x15   : > { %p2363_p10 = pnand %p1937_p9, %p2335_p1  ;;  %p2091_p11 = scmp.ne.s32.totalorder %s2835_s1, %s2090_s9 }
  0x16   : > { %p2097_p3 = scmp.lt.u32.totalorder %s2090_s9, %s2835_s1 }
  0x17   : > { %p2092_p12 = pneg %p2363_p10 }
  0x19   : > { %p2093_p13 = pnand %p2092_p12, %p2091_p11 }
  0x1b   : > { %p2094_p0 = pneg %p2093_p13 }
  0x1d   : > { %p2099_p5 = pnand %p2097_p3, %p2094_p0 }
  0x1f   : > { %2102 = shalt.err (!%p2099_p5)
}
  0x20   : > { %s2103_s14 = scalar_lea.vmem %s176_s29, 4096  ;;  %p2111_p1 = scmp.lt.s32.totalorder %s176_s29, %s176_s29 }
  0x21   : > { %p2104_p7 = scmp.ne.s32.totalorder %s176_s29, %s2103_s14  ;;  %p2112_p4 = scmp.lt.s32.totalorder %s2103_s14, %s2103_s14 }
  0x23   : > { %p2106_p9 = pnand %p2104_p7, %p2092_p12  ;;  %p2113_p8 = por %p2112_p4, %p2111_p1 }
  0x25   : > { %p2107_p6 = pneg %p2106_p9 }
  0x27   : > { %p2114_p2 = pnand %p2113_p8, %p2107_p6 }
  0x29   : > { %2117 = shalt.err (!%p2114_p2)
}
  0x2a   : > { %s2266_s21 = smov 64   ;;  %s2267_s22 = smov 4  }
  0x2b   : > { %1940 = dma.hbm_to_vmem [thread:$0]  (!%p2363_p10), %s2835_s1, 4096, %s176_s29, [#allocation8], %s2266_s21, %s2266_s21, %s2267_s22  }
  0x2c   : > { %s2118_s9 = scalar_lea.hbm %s2836_s2, 1024 }
  0x2d   : > { %p2119_p11 = scmp.ne.s32.totalorder %s2836_s2, %s2118_s9  ;;  %p2125_p4 = scmp.lt.u32.totalorder %s2118_s9, %s2836_s2 }
  0x2f   : > { %p2121_p1 = pnand %p2119_p11, %p2092_p12 }
  0x31   : > { %p2122_p2 = pneg %p2121_p1 }
  0x33   : > { %p2127_p6 = pnand %p2125_p4, %p2122_p2 }
  0x35   : > { %2130 = shalt.err (!%p2127_p6)
}
  0x36   : > { %s2131_s29 = scalar_lea.vmem %s2367_s6, 1024  ;;  %p2139_p3 = scmp.lt.s32.totalorder %s2367_s6, %s2367_s6 }
  0x37   : > { %p2132_p8 = scmp.ne.s32.totalorder %s2367_s6, %s2131_s29  ;;  %p2140_p5 = scmp.lt.s32.totalorder %s2131_s29, %s2131_s29 }
  0x39   : > { %p2134_p13 = pnand %p2132_p8, %p2092_p12  ;;  %p2141_p7 = por %p2140_p5, %p2139_p3 }
  0x3b   : > { %p2135_p0 = pneg %p2134_p13 }
  0x3d   : > { %p2142_p9 = pnand %p2141_p7, %p2135_p0 }
  0x3f   : > { %2145 = shalt.err (!%p2142_p9)
}
  0x40   : > { %1943 = dma.hbm_to_vmem [thread:$0]  (!%p2363_p10), %s2836_s2, 1024, %s2367_s6, [#allocation8], %s2266_s21, %s2266_s21, %s2267_s22  }
  0x41   : > { %s33_s5 = sadd.s32 1, %s2258_s19  ;;  %s42_s7 = sadd.s32 1, %s2250_s17 }
  0x42   : > { %p35_p12 = scmp.ge.s32.totalorder %s33_s5, 4  ;;  %p49_p11 = scmp.ne.s32.totalorder %s2250_s17, %s2246_s16 }
  0x43   : > { %p50_p1 = scmp.eq.s32.totalorder %s2262_s20, 0  ;;  %p1954_p2 = scmp.lt.s32.totalorder %s2262_s20, 4 }
  0x44   : > { %s2862_s5 = smov (%p35_p12, %s33_s5), 0  ;;  %p2849_p6 = scmp.ne.s32.totalorder %s2844_s24, 0 }
  0x45   : > { %p51_p4 = por %p50_p1, %p49_p11  ;;  %s37_s8 = ssub.s32 %s2258_s19, %s2862_s5 }
  0x46   : > { %p2426_p8 = por %p2849_p6, %p49_p11  ;;  %s205_s9 = sand.u32 1, %s2250_s17  }
  0x47   : > { %p40_p13 = scmp.eq.s32.totalorder %s37_s8, 0  ;;  %s1643_s6 = sshll.u32 %s205_s9, 8 }
  0x48   : > { %s1731_s21 = sshll.u32 %s2258_s19, 12  ;;  %s209_s24 = scalar_lea.vmem [#allocation4], %s1643_s6 }
  0x49   : > { %s2435_s22 = scalar_select %p40_p13, %s2250_s17, %s42_s7  }
  0x4a   : > { %s2440_s12 = scalar_lea.hbm %s2834_s0, %s1731_s21  ;;  %s219_s13 = sshll.u32 %s209_s24, 4  ;;  %s2448_s13 = int_to_ptr.vmem [resolvable:$true] %s219_s13 }
  0x4b   : > { %p2444_p10 = pnand %p1954_p2, %p51_p4  ;;  %s2450_s14 = scalar_lea.sflag [#allocation5], %s205_s9 }
  0x4c   : > { %s2146_s28 = scalar_lea.hbm %s2440_s12, 4096  ;;  %s2151_s6 = scalar_lea.hbm %s2834_s0, 16384 }
  0x4d   : > { %p2147_p0 = scmp.ne.s32.totalorder %s2440_s12, %s2146_s28  ;;  %p2148_p3 = pneg %p2444_p10 }
  0x4e   : > { %p2152_p9 = scmp.lt.u32.totalorder %s2440_s12, %s2834_s0  ;;  %p2153_p12 = scmp.lt.u32.totalorder %s2151_s6, %s2146_s28 }
  0x4f   : > { %p2149_p5 = pnand %p2148_p3, %p2147_p0  ;;  %p2155_p1 = scmp.lt.u32.totalorder %s2146_s28, %s2440_s12 }
  0x50   : > { %p2154_p11 = por %p2153_p12, %p2152_p9 }
  0x51   : > { %p2150_p7 = pneg %p2149_p5 }
  0x52   : > { %p2156_p2 = por %p2155_p1, %p2154_p11 }
  0x54   : > { %p2157_p4 = pnand %p2156_p2, %p2150_p7 }
  0x56   : > { %2160 = shalt.err (!%p2157_p4)
}
  0x57   : > { %s2161_s9 = scalar_lea.vmem %s2448_s13, 4096  ;;  %s2268_s11 = smov [#allocation4]  }
  0x58   : > { %p2162_p6 = scmp.ne.s32.totalorder %s2448_s13, %s2161_s9  ;;  %s2166_s24 = sshll.u32 %s2268_s11, 4  ;;  %s2167_s24 = int_to_ptr.vmem [resolvable:$false] %s2166_s24 }
  0x59   : > { %s2168_s7 = scalar_lea.vmem %s2167_s24, 8192  ;;  %p2169_p5 = scmp.lt.s32.totalorder %s2448_s13, %s2167_s24 }
  0x5a   : > { %p2164_p13 = pnand %p2162_p6, %p2148_p3  ;;  %p2170_p9 = scmp.lt.s32.totalorder %s2168_s7, %s2161_s9 }
  0x5c   : > { %p2165_p0 = pneg %p2164_p13  ;;  %p2171_p12 = por %p2170_p9, %p2169_p5 }
  0x5e   : > { %p2172_p11 = pnand %p2171_p12, %p2165_p0 }
  0x60   : > { %2175 = shalt.err (!%p2172_p11)
}
  0x61   : > { %s2269_s28 = smov 256   ;;  %s2270_s8 = smov 16  }
  0x62   : > { %1947 = dma.hbm_to_vmem [thread:$0]  (!%p2444_p10), %s2440_s12, 4096, %s2448_s13, %s2450_s14, %s2269_s28, %s2269_s28, %s2270_s8  }
  0x63   : > { %p2852_p3 = scmp.ne.s32.totalorder %s2847_s27, 0 }
  0x64   : > { %s2481_s6 = sand.u32 (!%p2852_p3), 1, %s2246_s16   ;;  %p2853_p7 = scmp.ne.s32.totalorder (!%p2852_p3), %s2845_s25, 0 }
  0x65   : > { %231 = sbr.rel (%p2852_p3) target bundleno = 656 (0x290), region = 36  ;;  %s1648_s21 = sshll.u32 (!%p2852_p3), %s2481_s6, 8 }
  0x66   : > { %s234_s10 = scalar_lea.sflag (!%p2852_p3), [#allocation5], %s2481_s6  ;;  %s2485_s9 = scalar_lea.vmem (!%p2852_p3), [#allocation4], %s1648_s21 }
  0x6c   : > { %2229 = dma.done.wait (%p2853_p7), %s234_s10, 4096  }
  0x6d   : > { %2231 = vsyncadd (%p2853_p7), %s234_s10, 4294963200  ;;  %p2854_p10 = scmp.ne.s32.totalorder %s2843_s23, 0 }
  0x6f   : > { %2233 = dma.done.wait (%p2854_p10), [#allocation8], 5120  }
  0x70   : > { %2235 = vsyncadd (%p2854_p10), [#allocation8], 4294962176  ;;  %v2018_v0 = vld [vmem:[#allocation7 + $0x40] sm:$0xff]   ;;  %v2022_v4 = vld [vmem:[#allocation7 + $0x48] sm:$0xff]   ;;  %vm295_vm0 = vcmask 7168   ;;  %s1651_s27 = sshll.u32 %s2481_s6, 7 }
  0x71   : > { %v2019_v1 = vld [vmem:[#allocation7 + $0xc0] sm:$0xff]   ;;  %1733 = vmatprep.subr.bf16.mxu0 %v2018_v0  ;;  %v2023_v5 = vld [vmem:[#allocation7 + $0xc8] sm:$0xff]   ;;  %v2026_v8 = vld [vmem:[#allocation7 + $0x50] sm:$0xff]   ;;  %s2749_s12 = scalar_lea.vmem [#allocation10], %s1651_s27  ;;  %s1732_s13 = sshll.u32 %s2254_s18, 11 }
  0x72   : > { %v2020_v2 = vld [vmem:[#allocation7] sm:$0xff]   ;;  %1797 = vmatprep.subr.bf16.mxu1 %v2019_v1  ;;  %v2024_v6 = vld [vmem:[#allocation7 + $0x8] sm:$0xff]   ;;  %v2027_v9 = vld [vmem:[#allocation7 + $0xd0] sm:$0xff]   ;;  %s1532_s29 = sshll.u32 %s2749_s12, 4  ;;  %s2781_s24 = scalar_lea.hbm %s2838_s4, %s1732_s13  ;;  %s2783_s29 = int_to_ptr.vmem [resolvable:$true] %s1532_s29 }
  0x73   : > { %v2021_v3 = vld [vmem:[#allocation7 + $0x80] sm:$0xff]   ;;  %1734 = vmatpush3.bf16.msra.mxu0 %v2020_v2  ;;  %v2025_v7 = vld [vmem:[#allocation7 + $0x88] sm:$0xff]   ;;  %v2028_v10 = vld [vmem:[#allocation7 + $0x10] sm:$0xff]   ;;  %s1519_s18 = scalar_lea.sflag [#allocation6], %s2481_s6  ;;  %s2176_s7 = scalar_lea.vmem %s2783_s29, 2048 }
  0x74   : > { %1798 = vmatpush3.bf16.msra.mxu1 %v2021_v3  ;;  %1735 = vmatprep.subr.bf16.mxu0 %v2022_v4  ;;  %v2029_v11 = vld [vmem:[#allocation7 + $0x90] sm:$0xff]   ;;  %v2030_v12 = vld [vmem:[#allocation7 + $0x58] sm:$0xff]   ;;  %v2034_v16 = vld [vmem:[#allocation7 + $0x60] sm:$0xff]   ;;  %p2177_p1 = scmp.ne.s32.totalorder %s2783_s29, %s2176_s7  ;;  %s2273_s28 = smov [#allocation10]  }
  0x75   : > { %1799 = vmatprep.subr.bf16.mxu1 %v2023_v5  ;;  %v2031_v13 = vld [vmem:[#allocation7 + $0xd8] sm:$0xff]   ;;  %v2035_v17 = vld [vmem:[#allocation7 + $0xe0] sm:$0xff]   ;;  %v2038_v20 = vld [vmem:[#allocation7 + $0x68] sm:$0xff]   ;;  %s2180_s8 = sshll.u32 %s2273_s28, 4  ;;  %s2181_s8 = int_to_ptr.vmem [resolvable:$false] %s2180_s8 }
  0x76   : > { %v2032_v14 = vld [vmem:[#allocation7 + $0x18] sm:$0xff]   ;;  %v2036_v18 = vld [vmem:[#allocation7 + $0x20] sm:$0xff]   ;;  %v2039_v21 = vld [vmem:[#allocation7 + $0xe8] sm:$0xff]   ;;  %p2178_p2 = pnand %p2177_p1, %p2426_p8  ;;  %s2182_s21 = scalar_lea.vmem %s2181_s8, 4096 }
  0x77   : > { %1736 = vmatpush3.bf16.msra.mxu0 %v2024_v6  ;;  %v2033_v15 = vld [vmem:[#allocation7 + $0x98] sm:$0xff]   ;;  %v2037_v19 = vld [vmem:[#allocation7 + $0xa0] sm:$0xff]   ;;  %v2040_v22 = vld [vmem:[#allocation7 + $0x28] sm:$0xff]   ;;  %p2183_p6 = scmp.lt.s32.totalorder %s2783_s29, %s2181_s8  ;;  %p2184_p13 = scmp.lt.s32.totalorder %s2182_s21, %s2176_s7 }
  0x78   : > { %1800 = vmatpush3.bf16.msra.mxu1 %v2025_v7  ;;  %1737 = vmatprep.subr.bf16.mxu0 %v2026_v8  ;;  %v2041_v23 = vld [vmem:[#allocation7 + $0xa8] sm:$0xff]   ;;  %v2042_v24 = vld [vmem:[#allocation7 + $0x70] sm:$0xff]   ;;  %v2046_v28 = vld [vmem:[#allocation7 + $0x78] sm:$0xff]   ;;  %p2179_p4 = pneg %p2178_p2 }
  0x79   : > { %1801 = vmatprep.subr.bf16.mxu1 %v2027_v9  ;;  %v2043_v25 = vld [vmem:[#allocation7 + $0xf0] sm:$0xff]   ;;  %v2047_v29 = vld [vmem:[#allocation7 + $0xf8] sm:$0xff]   ;;  %v312_v32 = vld [vmem:[%s2485_s9] sm:$0xff]  ;;  %p2185_p0 = por %p2184_p13, %p2183_p6 }
  0x7a   : > { %v2044_v26 = vld [vmem:[#allocation7 + $0x30] sm:$0xff]   ;;  %v2048_v30 = vld [vmem:[#allocation7 + $0x38] sm:$0xff]   ;;  %v313_v34 = vld [vmem:[%s2485_s9 + $0x8] sm:$0xff]  ;;  %v1018_v46 = vunpack.c.l.bf16 %v312_v32  ;;  %v1019_v47 = vunpack.c.h.bf16 %v312_v32 }
  0x7b   : > { %1738 = vmatpush3.bf16.msra.mxu0 %v2028_v10  ;;  %v2045_v27 = vld [vmem:[#allocation7 + $0xb0] sm:$0xff]   ;;  %v2049_v31 = vld [vmem:[#allocation7 + $0xb8] sm:$0xff]   ;;  %v2502_v38 = vld [vmem:[%s2485_s9 + $0x20] sm:$0xff]  ;;  %v1020_v54 = vunpack.c.l.bf16 %v313_v34  ;;  %v1021_v60 = vunpack.c.h.bf16 %v313_v34  ;;  %p2186_p5 = pnand %p2185_p0, %p2179_p4 }
  0x7c   : > { %1802 = vmatpush3.bf16.msra.mxu1 %v2029_v11  ;;  %1739 = vmatprep.subr.bf16.mxu0 %v2030_v12  ;;  %v314_v33 = vld [vmem:[%s2485_s9 + $0x10] sm:$0xff]  ;;  %v2499_v36 = vld [vmem:[%s2485_s9 + $0x18] sm:$0xff]  ;;  %v2512_v43 = vld [vmem:[%s2485_s9 + $0x28] sm:$0xff]  ;;  %v1082_v1 = vadd.f32 %v1019_v47, %v1018_v46 }
  0x7d   : > { %1803 = vmatprep.subr.bf16.mxu1 %v2031_v13  ;;  %v1653_v35 = vcombine.high %v312_v32, %v314_v33  ;;  %v1652_v37 = vcombine.low %v312_v32, %v314_v33  ;;  %v2505_v39 = vld [vmem:[%s2485_s9 + $0x30] sm:$0xff]  ;;  %v1655_v40 = vcombine.high %v313_v34, %v2499_v36  ;;  %v1654_v41 = vcombine.low %v313_v34, %v2499_v36  ;;  %v2515_v44 = vld [vmem:[%s2485_s9 + $0x38] sm:$0xff]  ;;  %v2520_v48 = vld [vmem:[%s2485_s9 + $0x40] sm:$0xff] }
  0x7e   : > { %v1657_v42 = vcombine.high %v2502_v38, %v2505_v39  ;;  %v1659_v45 = vcombine.high %v2512_v43, %v2515_v44  ;;  %v2523_v49 = vld [vmem:[%s2485_s9 + $0x50] sm:$0xff]  ;;  %v2526_v50 = vld [vmem:[%s2485_s9 + $0x48] sm:$0xff]  ;;  %v2529_v51 = vld [vmem:[%s2485_s9 + $0x58] sm:$0xff]  ;;  %v1656_v55 = vcombine.low %v2502_v38, %v2505_v39  ;;  %v1658_v56 = vcombine.low %v2512_v43, %v2515_v44 }
  0x7f   : > { %1740 = vmatpush3.bf16.msra.mxu0 %v2032_v14  ;;  %808 = vmatprep.mubr.bf16.mxu0 %v1653_v35  ;;  %v2532_v52 = vld [vmem:[%s2485_s9 + $0x60] sm:$0xff]  ;;  %v2535_v53 = vld [vmem:[%s2485_s9 + $0x70] sm:$0xff]  ;;  %v2542_v57 = vld [vmem:[%s2485_s9 + $0x68] sm:$0xff]  ;;  %v1661_v61 = vcombine.high %v2520_v48, %v2523_v49  ;;  %v1022_v2 = vunpack.c.l.bf16 %v314_v33  ;;  %v1023_v3 = vunpack.c.h.bf16 %v314_v33  ;;  %v1663_v4 = vcombine.high %v2526_v50, %v2529_v51 }
  0x80   : > { %1804 = vmatpush3.bf16.msra.mxu1 %v2033_v15  ;;  %1741 = vmatprep.subr.bf16.mxu0 %v2034_v16  ;;  %v2545_v58 = vld [vmem:[%s2485_s9 + $0x78] sm:$0xff]  ;;  %v2548_v59 = vld [vmem:[%s2485_s9 + $0x80] sm:$0xff]  ;;  %v2553_v62 = vld [vmem:[%s2485_s9 + $0x90] sm:$0xff]  ;;  %v1660_v5 = vcombine.low %v2520_v48, %v2523_v49  ;;  %v1662_v6 = vcombine.low %v2526_v50, %v2529_v51  ;;  %v1665_v7 = vcombine.high %v2532_v52, %v2535_v53  ;;  %v1024_v11 = vunpack.c.l.bf16 %v2499_v36 }
  0x81   : > { %1805 = vmatprep.subr.bf16.mxu1 %v2035_v17  ;;  %905 = vmatprep.mubr.bf16.mxu1 %v1655_v40  ;;  %v2556_v63 = vld [vmem:[%s2485_s9 + $0x88] sm:$0xff]  ;;  %v2559_v0 = vld [vmem:[%s2485_s9 + $0x98] sm:$0xff]  ;;  %v1667_v8 = vcombine.high %v2542_v57, %v2545_v58  ;;  %v1664_v9 = vcombine.low %v2532_v52, %v2535_v53  ;;  %v1083_v10 = vadd.f32 %v1082_v1, %v1020_v54  ;;  %v1034_v32 = vunpack.c.l.bf16 %v2520_v48 }
  0x82   : > { %v1666_v12 = vcombine.low %v2542_v57, %v2545_v58  ;;  %v1669_v13 = vcombine.high %v2548_v59, %v2553_v62  ;;  %v1671_v14 = vcombine.high %v2556_v63, %v2559_v0  ;;  %v1668_v15 = vcombine.low %v2548_v59, %v2553_v62 }
  0x83   : > { %1742 = vmatpush3.bf16.msra.mxu0 %v2036_v18  ;;  %v1670_v16 = vcombine.low %v2556_v63, %v2559_v0  ;;  %v1084_v17 = vadd.f32 %v1083_v10, %v1021_v60  ;;  %v1025_v18 = vunpack.c.h.bf16 %v2499_v36  ;;  %v1035_v33 = vunpack.c.h.bf16 %v2520_v48 }
  0x84   : > { %1806 = vmatpush3.bf16.msra.mxu1 %v2037_v19  ;;  %1743 = vmatprep.subr.bf16.mxu0 %v2038_v20  ;;  %v1087_v19 = vadd.f32 %v1023_v3, %v1022_v2  ;;  %v2082_v20 = vld [vmem:[#allocation9] sm:$0xff]   ;;  %v1036_v36 = vunpack.c.l.bf16 %v2526_v50  ;;  %v1038_v40 = vunpack.c.l.bf16 %v2523_v49  ;;  %v1043_v54 = vunpack.c.h.bf16 %v2532_v52 }
  0x85   : > { %1807 = vmatprep.subr.bf16.mxu1 %v2039_v21  ;;  %v1026_v21 = vunpack.c.l.bf16 %v2502_v38  ;;  %1085 = vadd.xlane.f32.xlu0 %v1084_v17  ;;  %v1046_v60 = vunpack.c.l.bf16 %v2535_v53  ;;  %v1047_v3 = vunpack.c.h.bf16 %v2535_v53  ;;  %v1048_v10 = vunpack.c.l.bf16 %v2545_v58 }
  0x86   : > { %v1051_v17 = vunpack.c.h.bf16 %v2548_v59 }
  0x87   : > { %1744 = vmatpush3.bf16.msra.mxu0 %v2040_v22  ;;  %v1027_v22 = vunpack.c.h.bf16 %v2502_v38 }
  0x88   : > { %1808 = vmatpush3.bf16.msra.mxu1 %v2041_v23  ;;  %1745 = vmatprep.subr.bf16.mxu0 %v2042_v24  ;;  %v1028_v23 = vunpack.c.l.bf16 %v2512_v43  ;;  %v1029_v24 = vunpack.c.h.bf16 %v2512_v43  ;;  %v1040_v43 = vunpack.c.l.bf16 %v2529_v51 }
  0x89   : > { %1809 = vmatprep.subr.bf16.mxu1 %v2043_v25  ;;  %v1088_v25 = vadd.f32 %v1087_v19, %v1024_v11  ;;  %v1050_v11 = vunpack.c.l.bf16 %v2548_v59  ;;  %v2625_v19 = vld [vmem:[%s2485_s9 + $0xb0] sm:$0xff] }
  0x8b   : > { %1746 = vmatpush3.bf16.msra.mxu0 %v2044_v26  ;;  %v1030_v26 = vunpack.c.l.bf16 %v2505_v39  ;;  %v1089_v34 = vadd.f32 %v1088_v25, %v1025_v18  ;;  %v2621_v18 = vld [vmem:[%s2485_s9 + $0xa0] sm:$0xff] }
  0x8c   : > { %1810 = vmatpush3.bf16.msra.mxu1 %v2045_v27  ;;  %1747 = vmatprep.subr.bf16.mxu0 %v2046_v28  ;;  %v1031_v27 = vunpack.c.h.bf16 %v2505_v39  ;;  %v1032_v28 = vunpack.c.l.bf16 %v2515_v44  ;;  %v1102_v39 = vadd.f32 %v1035_v33, %v1034_v32  ;;  %v1672_v59 = vcombine.low %v2621_v18, %v2625_v19 }
  0x8d   : > { %1811 = vmatprep.subr.bf16.mxu1 %v2047_v29  ;;  %v2083_v29 = vld [vmem:[#allocation9 + $0x8] sm:$0xff]   ;;  %1090 = vadd.xlane.f32.xlu0 %v1089_v34 }
  0x8e   : > { %v1097_v35 = vadd.f32 %v1031_v27, %v1030_v26  ;;  %v1103_v47 = vadd.f32 %v1102_v39, %v1036_v36  ;;  %v2651_v39 = vld [vmem:[%s2485_s9 + $0xe8] sm:$0xff] }
  0x8f   : > { %1748 = vmatpush3.bf16.msra.mxu0 %v2048_v30  ;;  %v1092_v30 = vadd.f32 %v1027_v22, %v1026_v21  ;;  %v1053_v21 = vunpack.c.h.bf16 %v2556_v63  ;;  %v1122_v22 = vadd.f32 %v1051_v17, %v1050_v11 }
  0x90   : > { %1812 = vmatpush3.bf16.msra.mxu1 %v2049_v31  ;;  %v1033_v31 = vunpack.c.h.bf16 %v2515_v44  ;;  %1877 = vmatprep.subr.bf16.mxu0 %v2082_v20  ;;  %v1041_v44 = vunpack.c.h.bf16 %v2529_v51 }
  0x91   : > { %1909 = vmatprep.subr.bf16.mxu1 %v2082_v20  ;;  %v1093_v38 = vadd.f32 %v1092_v30, %v1028_v23  ;;  %v1058_v23 = vunpack.c.l.bf16 %v2621_v18  ;;  %v2639_v30 = vld [vmem:[%s2485_s9 + $0xc8] sm:$0xff] }
  0x92   : > { %809 = vmatmul.mubr.bf16.vlgmr.msra.gmra.mrb[0].mxu0 %v1652_v37  ;;  %v1037_v37 = vunpack.c.h.bf16 %v2526_v50 }
  0x93   : > { %906 = vmatmul.mubr.bf16.vlgmr.msra.gmra.mrb[0].mxu1 %v1654_v41  ;;  %816 = vmatprep.mubr.bf16.mxu0 %v1657_v42  ;;  %v1039_v41 = vunpack.c.h.bf16 %v2523_v49  ;;  %v1098_v42 = vadd.f32 %v1097_v35, %v1032_v28  ;;  %v1094_v46 = vadd.f32 %v1093_v38, %v1029_v24  ;;  %v1044_v49 = vunpack.c.l.bf16 %v2542_v57  ;;  %v2634_v24 = vld [vmem:[%s2485_s9 + $0xc0] sm:$0xff] }
  0x94   : > { %913 = vmatprep.mubr.bf16.mxu1 %v1659_v45  ;;  %1878 = vmatpush3.bf16.msra.mxu0 %v2082_v20  ;;  %v1042_v45 = vunpack.c.l.bf16 %v2532_v52  ;;  %v1066_v34 = vunpack.c.l.bf16 %v2634_v24  ;;  %v1673_v35 = vcombine.high %v2621_v18, %v2625_v19 }
  0x95   : > { %1917 = vmatpush3.bf16.msra.mxu1 %v2082_v20  ;;  %1879 = vmatprep.subr.bf16.mxu0 %v2083_v29  ;;  %v1107_v48 = vadd.f32 %v1039_v41, %v1038_v40  ;;  %v2628_v20 = vld [vmem:[%s2485_s9 + $0xa8] sm:$0xff] }
  0x96   : > { %1910 = vmatprep.subr.bf16.mxu1 %v2083_v29  ;;  %1095 = vadd.xlane.f32.xlu1 %v1094_v46  ;;  %v1112_v2 = vadd.f32 %v1043_v54, %v1042_v45  ;;  %v1060_v27 = vunpack.c.l.bf16 %v2628_v20  ;;  %v1061_v28 = vunpack.c.h.bf16 %v2628_v20  ;;  %v2658_v45 = vld [vmem:[%s2485_s9 + $0xb8] sm:$0xff]  ;;  %v1069_v46 = vunpack.c.h.bf16 %v2639_v30 }
  0x97   : > { %v1108_v1 = vadd.f32 %v1107_v48, %v1040_v43  ;;  %v1054_v48 = vunpack.c.l.bf16 %v2553_v62  ;;  %v1055_v54 = vunpack.c.h.bf16 %v2553_v62 }
  0x98   : > { %v1113_v51 = vadd.f32 %v1112_v2, %v1044_v49  ;;  %1880 = vmatpush3.bf16.msra.mxu0 %v2083_v29  ;;  %v1057_v49 = vunpack.c.h.bf16 %v2559_v0  ;;  %v342_v2 = vld [vmem:[%s2485_s9 + $0xf0] sm:$0xff] }
  0x99   : > { %v1109_v50 = vadd.f32 %v1108_v1, %v1041_v44  ;;  %1918 = vmatpush3.bf16.msra.mxu1 %v2083_v29  ;;  %v1067_v29 = vunpack.c.h.bf16 %v2634_v24  ;;  %v2085_v44 = vld [vmem:[#allocation9 + $0x18] sm:$0xff]   ;;  %v1065_v1 = vunpack.c.h.bf16 %v2658_v45 }
  0x9a   : > { %817 = vmatmul.mubr.bf16.gmra.mrb[4].mxu0 %v1656_v55  ;;  %v1099_v55 = vadd.f32 %v1098_v42, %v1033_v31  ;;  %v2642_v31 = vld [vmem:[%s2485_s9 + $0xe0] sm:$0xff] }
  0x9b   : > { %914 = vmatmul.mubr.bf16.gmra.mrb[4].mxu1 %v1658_v56  ;;  %824 = vmatprep.mubr.bf16.mxu0 %v1661_v61  ;;  %v1045_v56 = vunpack.c.h.bf16 %v2542_v57  ;;  %v1104_v61 = vadd.f32 %v1103_v47, %v1037_v37  ;;  %v1068_v37 = vunpack.c.l.bf16 %v2639_v30  ;;  %v1074_v38 = vunpack.c.l.bf16 %v2642_v31 }
  0x9c   : > { %921 = vmatprep.mubr.bf16.mxu1 %v1663_v4  ;;  %v2084_v4 = vld [vmem:[#allocation9 + $0x10] sm:$0xff]   ;;  %1100 = vadd.xlane.f32.xlu1 %v1099_v55  ;;  %v1142_v42 = vadd.f32 %v1067_v29, %v1066_v34  ;;  %v1075_v43 = vunpack.c.h.bf16 %v2642_v31  ;;  %v1076_v47 = vunpack.c.l.bf16 %v2651_v39  ;;  %v1056_v55 = vunpack.c.l.bf16 %v2559_v0 }
  0x9d   : > { %1105 = vadd.xlane.f32.xlu0 %v1104_v61  ;;  %v1114_v25 = vadd.f32 %v1113_v51, %v1045_v56  ;;  %1881 = vmatprep.subr.bf16.mxu0 %v2084_v4  ;;  %v1127_v57 = vadd.f32 %v1055_v54, %v1054_v48  ;;  %v338_v56 = vld [vmem:[%s2485_s9 + $0xd0] sm:$0xff]  ;;  %v1064_v61 = vunpack.c.l.bf16 %v2658_v45  ;;  %v1078_v51 = vunpack.c.l.bf16 %v342_v2 }
  0x9e   : > { %1911 = vmatprep.subr.bf16.mxu1 %v2084_v4  ;;  %1882 = vmatpush3.bf16.msra.mxu0 %v2084_v4  ;;  %v1143_v53 = vadd.f32 %v1142_v42, %v1068_v37  ;;  %v1674_v34 = vcombine.low %v2628_v20, %v2658_v45  ;;  %v1681_v29 = vcombine.high %v2642_v31, %v342_v2  ;;  %v2086_v37 = vld [vmem:[#allocation9 + $0x20] sm:$0xff]  }
  0x9f   : > { %1919 = vmatpush3.bf16.msra.mxu1 %v2084_v4  ;;  %1883 = vmatprep.subr.bf16.mxu0 %v2085_v44 }
  0xa0   : > { %1110 = vadd.xlane.f32.xlu1 %v1109_v50  ;;  %1912 = vmatprep.subr.bf16.mxu1 %v2085_v44  ;;  %v1144_v11 = vadd.f32 %v1143_v53, %v1069_v46 }
  0xa1   : > { %1115 = vadd.xlane.f32.xlu0 %v1114_v25 }
  0xa2   : > { %825 = vmatmul.mubr.bf16.gmra.mrb[8].mxu0 %v1660_v5  ;;  %v1049_v5 = vunpack.c.h.bf16 %v2545_v58  ;;  %v1062_v58 = vunpack.c.l.bf16 %v2625_v19 }
  0xa3   : > { %922 = vmatmul.mubr.bf16.gmra.mrb[8].mxu1 %v1662_v6  ;;  %832 = vmatprep.mubr.bf16.mxu0 %v1665_v7  ;;  %v1117_v6 = vadd.f32 %v1047_v3, %v1046_v60  ;;  %v1052_v7 = vunpack.c.l.bf16 %v2556_v63  ;;  %v1077_v60 = vunpack.c.h.bf16 %v2651_v39  ;;  %v1128_v3 = vadd.f32 %v1127_v57, %v1056_v55 }
  0xa4   : > { %929 = vmatprep.mubr.bf16.mxu1 %v1667_v8  ;;  %v1059_v8 = vunpack.c.h.bf16 %v2621_v18  ;;  %1884 = vmatpush3.bf16.msra.mxu0 %v2085_v44  ;;  %v1677_v63 = vcombine.high %v2634_v24, %v338_v56  ;;  %v1676_v18 = vcombine.low %v2634_v24, %v338_v56  ;;  %v2087_v24 = vld [vmem:[#allocation9 + $0x28] sm:$0xff]  }
  0xa5   : > { %v1118_v26 = vadd.f32 %v1117_v6, %v1048_v10  ;;  %v1123_v32 = vadd.f32 %v1122_v22, %v1052_v7  ;;  %v1070_v10 = vunpack.c.l.bf16 %v338_v56  ;;  %1920 = vmatpush3.bf16.msra.mxu1 %v2085_v44  ;;  %v1129_v6 = vadd.f32 %v1128_v3, %v1057_v49  ;;  %1885 = vmatprep.subr.bf16.mxu0 %v2086_v37 }
  0xa6   : > { %v1132_v33 = vadd.f32 %v1059_v8, %v1058_v23  ;;  %v1079_v22 = vunpack.c.h.bf16 %v342_v2  ;;  %v343_v23 = vld [vmem:[%s2485_s9 + $0xf8] sm:$0xff]  ;;  %1913 = vmatprep.subr.bf16.mxu1 %v2086_v37 }
  0xa7   : > { %v1119_v36 = vadd.f32 %v1118_v26, %v1049_v5  ;;  %v1124_v40 = vadd.f32 %v1123_v32, %v1053_v21  ;;  %v1071_v5 = vunpack.c.h.bf16 %v338_v56 }
  0xa8   : > { %v1133_v41 = vadd.f32 %v1132_v33, %v1060_v27  ;;  %v1080_v27 = vunpack.c.l.bf16 %v343_v23  ;;  %1886 = vmatpush3.bf16.msra.mxu0 %v2086_v37 }
  0xa9   : > { %1125 = vadd.xlane.f32.xlu0 %v1124_v40  ;;  %1120 = vadd.xlane.f32.xlu1 %v1119_v36  ;;  %v1147_v21 = vadd.f32 %v1071_v5, %v1070_v10  ;;  %v1682_v36 = vcombine.low %v2651_v39, %v343_v23 }
  0xaa   : > { %833 = vmatmul.mubr.bf16.gmra.mrb[12].mxu0 %v1664_v9  ;;  %v1134_v52 = vadd.f32 %v1133_v41, %v1061_v28  ;;  %v1152_v9 = vadd.f32 %v1075_v43, %v1074_v38  ;;  %v1157_v28 = vadd.f32 %v1079_v22, %v1078_v51  ;;  %1921 = vmatpush3.bf16.msra.mxu1 %v2086_v37  ;;  %v2271_v38 = vmov 0.0  }
  0xab   : > { %930 = vmatmul.mubr.bf16.gmra.mrb[12].mxu1 %v1666_v12  ;;  %840 = vmatprep.mubr.bf16.mxu0 %v1669_v13  ;;  %v1063_v12 = vunpack.c.h.bf16 %v2625_v19  ;;  %v1675_v13 = vcombine.high %v2628_v20, %v2658_v45  ;;  %v1683_v20 = vcombine.high %v2651_v39, %v343_v23  ;;  %296 = vst.msk [vmem:[#allocation3] sm:$0xff] %vm295_vm0, %v2271_v38  ;;  %297 = vst.msk [vmem:[#allocation3 + $0x8] sm:$0xff] %vm295_vm0, %v2271_v38  ;;  %v2272_v41 = vmov 0  }
  0xac   : > { %937 = vmatprep.mubr.bf16.mxu1 %v1671_v14  ;;  %v339_v14 = vld [vmem:[%s2485_s9 + $0xd8] sm:$0xff]  ;;  %v1153_v17 = vadd.f32 %v1152_v9, %v1076_v47  ;;  %v1158_v33 = vadd.f32 %v1157_v28, %v1080_v27  ;;  %1887 = vmatprep.subr.bf16.mxu0 %v2087_v24  ;;  %298 = vst.msk [vmem:[#allocation3 + $0x10] sm:$0xff] %vm295_vm0, %v2271_v38  ;;  %299 = vst.msk [vmem:[#allocation3 + $0x18] sm:$0xff] %vm295_vm0, %v2271_v38 }
  0xad   : > { %v1137_v4 = vadd.f32 %v1063_v12, %v1062_v58  ;;  %v1072_v50 = vunpack.c.l.bf16 %v339_v14  ;;  %1135 = vadd.xlane.f32.xlu0 %v1134_v52  ;;  %v1073_v8 = vunpack.c.h.bf16 %v339_v14  ;;  %1130 = vadd.xlane.f32.xlu1 %v1129_v6  ;;  %v1679_v0 = vcombine.high %v2639_v30, %v339_v14  ;;  %300 = vst.msk [vmem:[#allocation3 + $0x20] sm:$0xff] %vm295_vm0, %v2271_v38 }
  0xae   : > { %v1154_v32 = vadd.f32 %v1153_v17, %v1077_v60  ;;  %v1678_v19 = vcombine.low %v2639_v30, %v339_v14  ;;  %1914 = vmatprep.subr.bf16.mxu1 %v2087_v24  ;;  %1888 = vmatpush3.bf16.msra.mxu0 %v2087_v24  ;;  %v2088_v30 = vld [vmem:[#allocation9 + $0x30] sm:$0xff]   ;;  %301 = vst.msk [vmem:[#allocation3 + $0x28] sm:$0xff] %vm295_vm0, %v2271_v38  ;;  %302 = vst.msk [vmem:[#allocation3 + $0x30] sm:$0xff] %vm295_vm0, %v2271_v38 }
  0xaf   : > { %v1138_v7 = vadd.f32 %v1137_v4, %v1064_v61  ;;  %v1148_v26 = vadd.f32 %v1147_v21, %v1072_v50  ;;  %1922 = vmatpush3.bf16.msra.mxu1 %v2087_v24  ;;  %1889 = vmatprep.subr.bf16.mxu0 %v2088_v30  ;;  %303 = vst.msk [vmem:[#allocation3 + $0x38] sm:$0xff] %vm295_vm0, %v2271_v38  ;;  %304 = vst.msk [vmem:[#allocation3 + $0x40] sm:$0xff] %vm295_vm0, %v2271_v38 }
  0xb0   : > { %1915 = vmatprep.subr.bf16.mxu1 %v2088_v30  ;;  %305 = vst.msk [vmem:[#allocation3 + $0x48] sm:$0xff] %vm295_vm0, %v2271_v38  ;;  %306 = vst.msk [vmem:[#allocation3 + $0x50] sm:$0xff] %vm295_vm0, %v2271_v38  ;;  %2017 = vset.pattern.permute.xlu1 %v2272_v41 }
  0xb1   : > { %v1139_v25 = vadd.f32 %v1138_v7, %v1065_v1  ;;  %1145 = vadd.xlane.f32.xlu0 %v1144_v11  ;;  %v1149_v62 = vadd.f32 %v1148_v26, %v1073_v8  ;;  %307 = vst.msk [vmem:[#allocation3 + $0x58] sm:$0xff] %vm295_vm0, %v2271_v38  ;;  %308 = vst.msk [vmem:[#allocation3 + $0x60] sm:$0xff] %vm295_vm0, %v2271_v38 }
  0xb2   : > { %841 = vmatmul.mubr.bf16.gmra.mrb[16].mxu0 %v1668_v15  ;;  %v1081_v15 = vunpack.c.h.bf16 %v343_v23  ;;  %309 = vst.msk [vmem:[#allocation3 + $0x68] sm:$0xff] %vm295_vm0, %v2271_v38  ;;  %310 = vst.msk [vmem:[#allocation3 + $0x70] sm:$0xff] %vm295_vm0, %v2271_v38  ;;  %v1002_v39 = vld [vmem:[#allocation3] sm:$0xff]  ;;  %2016 = vset.pattern.permute.xlu0 %v2272_v41  ;;  %v1003_v43 = vld [vmem:[#allocation3 + $0x8] sm:$0xff] }
  0xb3   : > { %938 = vmatmul.mubr.bf16.gmra.mrb[16].mxu1 %v1670_v16  ;;  %848 = vmatprep.mubr.bf16.mxu0 %v1673_v35  ;;  %v1680_v35 = vcombine.low %v2642_v31, %v342_v2  ;;  %v2089_v31 = vld [vmem:[#allocation9 + $0x38] sm:$0xff]   ;;  %311 = vst.msk [vmem:[#allocation3 + $0x78] sm:$0xff] %vm295_vm0, %v2271_v38  ;;  %v1004_v45 = vld [vmem:[#allocation3 + $0x10] sm:$0xff] }
  0xb4   : > { %945 = vmatprep.mubr.bf16.mxu1 %v1675_v13  ;;  %1140 = vadd.xlane.f32.xlu1 %v1139_v25  ;;  %v1159_v16 = vadd.f32 %v1158_v33, %v1081_v15  ;;  %v1006_v48 = vld [vmem:[#allocation3 + $0x20] sm:$0xff]  ;;  %v1005_v52 = vld [vmem:[#allocation3 + $0x18] sm:$0xff] }
  0xb5   : > { %1155 = vadd.xlane.f32.xlu0 %v1154_v32  ;;  %1890 = vmatpush3.bf16.msra.mxu0 %v2088_v30  ;;  %v1008_v49 = vld [vmem:[#allocation3 + $0x30] sm:$0xff]  ;;  %v1007_v12 = vld [vmem:[#allocation3 + $0x28] sm:$0xff] }
  0xb6   : > { %1923 = vmatpush3.bf16.msra.mxu1 %v2088_v30  ;;  %1891 = vmatprep.subr.bf16.mxu0 %v2089_v31  ;;  %v1010_v1 = vld [vmem:[#allocation3 + $0x40] sm:$0xff]  ;;  %v1009_v3 = vld [vmem:[#allocation3 + $0x38] sm:$0xff] }
  0xb7   : > { %1916 = vmatprep.subr.bf16.mxu1 %v2089_v31  ;;  %v1012_v11 = vld [vmem:[#allocation3 + $0x50] sm:$0xff]  ;;  %v1011_v6 = vld [vmem:[#allocation3 + $0x48] sm:$0xff] }
  0xb8   : > { %1150 = vadd.xlane.f32.xlu1 %v1149_v62  ;;  %v1014_v21 = vld [vmem:[#allocation3 + $0x60] sm:$0xff]  ;;  %v1013_v26 = vld [vmem:[#allocation3 + $0x58] sm:$0xff] }
  0xb9   : > { %1892 = vmatpush3.bf16.msra.mxu0 %v2089_v31  ;;  %v1016_v28 = vld [vmem:[#allocation3 + $0x70] sm:$0xff]  ;;  %v1015_v33 = vld [vmem:[#allocation3 + $0x68] sm:$0xff] }
  0xba   : > { %849 = vmatmul.mubr.bf16.gmra.mrb[20].mxu0 %v1672_v59  ;;  %1924 = vmatpush3.bf16.msra.mxu1 %v2089_v31 }
  0xbb   : > { %946 = vmatmul.mubr.bf16.gmra.mrb[20].mxu1 %v1674_v34  ;;  %856 = vmatprep.mubr.bf16.mxu0 %v1677_v63 }
  0xbc   : > { %953 = vmatprep.mubr.bf16.mxu1 %v1679_v0  ;;  %1160 = vadd.xlane.f32.xlu1 %v1159_v16 }
  0xc2   : > { %857 = vmatmul.mubr.bf16.gmra.mrb[24].mxu0 %v1676_v18 }
  0xc3   : > { %954 = vmatmul.mubr.bf16.gmra.mrb[24].mxu1 %v1678_v19  ;;  %864 = vmatprep.mubr.bf16.mxu0 %v1681_v29  ;;  %v1017_v19 = vld [vmem:[#allocation3 + $0x78] sm:$0xff] }
  0xc4   : > { %961 = vmatprep.mubr.bf16.mxu1 %v1683_v20 }
  0xca   : > { %865 = vmatmul.mubr.bf16.gmra.mrb[28].mxu0 %v1680_v35 }
  0xcb   : > { %962 = vmatmul.mubr.bf16.gmra.mrb[28].mxu1 %v1682_v36 }
 0x112   : > { %v1086_v40 = vpop.xlane.xlu0 %1085 }
 0x113   : > { %v1162_v42 = vadd.f32 %v1086_v40, %v1002_v39 }
 0x115   : > { %1179 = vst.msk [vmem:[#allocation3] sm:$0xff] %vm295_vm0, %v1162_v42 }
 0x11a   : > { %v1091_v44 = vpop.xlane.xlu0 %1090 }
 0x11b   : > { %v1163_v46 = vadd.f32 %v1091_v44, %v1003_v43 }
 0x11c   : > { %v1238_v57 = vld [vmem:[#allocation3] sm:$0xff] }
 0x11d   : > { %1180 = vst.msk [vmem:[#allocation3 + $0x8] sm:$0xff] %vm295_vm0, %v1163_v46  ;;  %1257 = vperm.xlu0 %2016, %v1238_v57  }
 0x123   : > { %v1096_v47 = vpop.xlane.xlu1 %1095 }
 0x124   : > { %v1164_v54 = vadd.f32 %v1096_v47, %v1004_v45  ;;  %v1239_v60 = vld [vmem:[#allocation3 + $0x8] sm:$0xff] }
 0x125   : > { %1262 = vperm.xlu1 %2017, %v1239_v60  }
 0x126   : > { %1181 = vst.msk [vmem:[#allocation3 + $0x10] sm:$0xff] %vm295_vm0, %v1164_v54 }
 0x129   : > { %v1101_v55 = vpop.xlane.xlu1 %1100 }
 0x12a   : > { %v1106_v53 = vpop.xlane.xlu0 %1105  ;;  %v1165_v58 = vadd.f32 %v1101_v55, %v1005_v52 }
 0x12b   : > { %v1166_v9 = vadd.f32 %v1106_v53, %v1006_v48 }
 0x12c   : > { %1182 = vst.msk [vmem:[#allocation3 + $0x18] sm:$0xff] %vm295_vm0, %v1165_v58 }
 0x12d   : > { %1183 = vst.msk [vmem:[#allocation3 + $0x20] sm:$0xff] %vm295_vm0, %v1166_v9  ;;  %v1111_v61 = vpop.xlane.xlu1 %1110  ;;  %v1240_v2 = vld [vmem:[#allocation3 + $0x10] sm:$0xff] }
 0x12e   : > { %v1116_v13 = vpop.xlane.xlu0 %1115  ;;  %v1167_v14 = vadd.f32 %v1111_v61, %v1007_v12  ;;  %1267 = vperm.xlu1 %2017, %v1240_v2  }
 0x12f   : > { %v1168_v56 = vadd.f32 %v1116_v13, %v1008_v49 }
 0x130   : > { %1184 = vst.msk [vmem:[#allocation3 + $0x28] sm:$0xff] %vm295_vm0, %v1167_v14 }
 0x131   : > { %1185 = vst.msk [vmem:[#allocation3 + $0x30] sm:$0xff] %vm295_vm0, %v1168_v56 }
 0x133   : > { %v1241_v50 = vld [vmem:[#allocation3 + $0x18] sm:$0xff] }
 0x134   : > { %1272 = vperm.xlu1 %2017, %v1241_v50   ;;  %v1242_v8 = vld [vmem:[#allocation3 + $0x20] sm:$0xff] }
 0x136   : > { %v1126_v4 = vpop.xlane.xlu0 %1125  ;;  %v1121_v5 = vpop.xlane.xlu1 %1120 }
 0x137   : > { %v1170_v10 = vadd.f32 %v1126_v4, %v1010_v1  ;;  %v1169_v17 = vadd.f32 %v1121_v5, %v1009_v3  ;;  %v1243_v62 = vld [vmem:[#allocation3 + $0x28] sm:$0xff] }
 0x138   : > { %1277 = vperm.xlu1 %2017, %v1242_v8   ;;  %v1244_v16 = vld [vmem:[#allocation3 + $0x30] sm:$0xff] }
 0x139   : > { %1187 = vst.msk [vmem:[#allocation3 + $0x40] sm:$0xff] %vm295_vm0, %v1170_v10  ;;  %1186 = vst.msk [vmem:[#allocation3 + $0x38] sm:$0xff] %vm295_vm0, %v1169_v17 }
 0x13a   : > { %v1136_v51 = vpop.xlane.xlu0 %1135  ;;  %v1131_v22 = vpop.xlane.xlu1 %1130 }
 0x13b   : > { %v1172_v7 = vadd.f32 %v1136_v51, %v1012_v11  ;;  %v1171_v23 = vadd.f32 %v1131_v22, %v1011_v6 }
 0x13c   : > { %1282 = vperm.xlu1 %2017, %v1243_v62  }
 0x13d   : > { %1189 = vst.msk [vmem:[#allocation3 + $0x50] sm:$0xff] %vm295_vm0, %v1172_v7  ;;  %1188 = vst.msk [vmem:[#allocation3 + $0x48] sm:$0xff] %vm295_vm0, %v1171_v23 }
 0x13e   : > { %v1146_v25 = vpop.xlane.xlu0 %1145 }
 0x13f   : > { %v1174_v27 = vadd.f32 %v1146_v25, %v1014_v21 }
 0x140   : > { %1287 = vperm.xlu1 %2017, %v1244_v16   ;;  %v1245_v35 = vld [vmem:[#allocation3 + $0x38] sm:$0xff]  ;;  %v1246_v37 = vld [vmem:[#allocation3 + $0x40] sm:$0xff] }
 0x141   : > { %v1141_v32 = vpop.xlane.xlu1 %1140  ;;  %1191 = vst.msk [vmem:[#allocation3 + $0x60] sm:$0xff] %vm295_vm0, %v1174_v27 }
 0x142   : > { %v1173_v59 = vadd.f32 %v1141_v32, %v1013_v26  ;;  %v1156_v15 = vpop.xlane.xlu0 %1155 }
 0x143   : > { %v1176_v34 = vadd.f32 %v1156_v15, %v1016_v28 }
 0x144   : > { %1190 = vst.msk [vmem:[#allocation3 + $0x58] sm:$0xff] %vm295_vm0, %v1173_v59  ;;  %v1247_v18 = vld [vmem:[#allocation3 + $0x48] sm:$0xff]  ;;  %1292 = vperm.xlu1 %2017, %v1245_v35   ;;  %v1248_v30 = vld [vmem:[#allocation3 + $0x50] sm:$0xff] }
 0x145   : > { %v1151_v63 = vpop.xlane.xlu1 %1150  ;;  %1193 = vst.msk [vmem:[#allocation3 + $0x70] sm:$0xff] %vm295_vm0, %v1176_v34  ;;  %1302 = vperm.xlu0 %2016, %v1247_v18  }
 0x146   : > { %v1175_v0 = vadd.f32 %v1151_v63, %v1015_v33 }
 0x148   : > { %1192 = vst.msk [vmem:[#allocation3 + $0x68] sm:$0xff] %vm295_vm0, %v1175_v0  ;;  %1297 = vperm.xlu1 %2017, %v1246_v37   ;;  %v1250_v38 = vld [vmem:[#allocation3 + $0x60] sm:$0xff] }
 0x149   : > { %v1161_v29 = vpop.xlane.xlu1 %1160 }
 0x14a   : > { %v1177_v20 = vadd.f32 %v1161_v29, %v1017_v19 }
 0x14b   : > { %v1249_v36 = vld [vmem:[#allocation3 + $0x58] sm:$0xff] }
 0x14c   : > { %1194 = vst.msk [vmem:[#allocation3 + $0x78] sm:$0xff] %vm295_vm0, %v1177_v20  ;;  %1312 = vperm.xlu0 %2016, %v1249_v36   ;;  %1307 = vperm.xlu1 %2017, %v1248_v30   ;;  %v1252_v39 = vld [vmem:[#allocation3 + $0x70] sm:$0xff] }
 0x14f   : > { %v1251_v24 = vld [vmem:[#allocation3 + $0x68] sm:$0xff] }
 0x150   : > { %1322 = vperm.xlu0 %2016, %v1251_v24   ;;  %1317 = vperm.xlu1 %2017, %v1250_v38  }
 0x153   : > { %v1253_v31 = vld [vmem:[#allocation3 + $0x78] sm:$0xff] }
 0x154   : > { %1332 = vperm.xlu0 %2016, %v1253_v31   ;;  %1327 = vperm.xlu1 %2017, %v1252_v39  }
 0x165   : > { %v1749_v40 = vpop.f32.mrb[0].mxu0 }
 0x166   : > { %v1813_v41 = vpop.f32.mrb[0].mxu1  ;;  %v1750_v42 = vpop.f32.mrb[1].mxu0 }
 0x167   : > { %v1751_v43 = vadd.f32 %v1750_v42, %v1749_v40  ;;  %v1814_v44 = vpop.f32.mrb[1].mxu1  ;;  %v1752_v45 = vpop.f32.mrb[2].mxu0 }
 0x168   : > { %v1815_v46 = vadd.f32 %v1814_v44, %v1813_v41  ;;  %v1816_v47 = vpop.f32.mrb[2].mxu1  ;;  %v1753_v48 = vpop.f32.mrb[3].mxu0 }
 0x169   : > { %v1754_v54 = vadd.f32 %v1753_v48, %v1752_v45  ;;  %v1817_v52 = vpop.f32.mrb[3].mxu1 }
 0x16a   : > { %v908_v53 = vadd.f32 %v1815_v46, %v1751_v43  ;;  %v1818_v9 = vadd.f32 %v1817_v52, %v1816_v47 }
 0x16c   : > { %v911_v55 = vadd.f32 %v1818_v9, %v1754_v54 }
 0x16d   : > { %v1755_v49 = vpop.f32.mrb[4].mxu0 }
 0x16e   : > { %v1819_v57 = vpop.f32.mrb[4].mxu1  ;;  %v1756_v58 = vpop.f32.mrb[5].mxu0  ;;  %v1214_v12 = vpack.c.bf16 %v911_v55, %v908_v53 }
 0x16f   : > { %v1757_v13 = vadd.f32 %v1756_v58, %v1755_v49  ;;  %v1820_v56 = vpop.f32.mrb[5].mxu1  ;;  %v1758_v60 = vpop.f32.mrb[6].mxu0 }
 0x170   : > { %v1821_v61 = vadd.f32 %v1820_v56, %v1819_v57  ;;  %v1822_v1 = vpop.f32.mrb[6].mxu1  ;;  %1893 = vmatprep.mubr.bf16.mxu0 %v1214_v12  ;;  %v1759_v14 = vpop.f32.mrb[7].mxu0 }
 0x171   : > { %v1760_v2 = vadd.f32 %v1759_v14, %v1758_v60  ;;  %v1823_v3 = vpop.f32.mrb[7].mxu1 }
 0x172   : > { %v916_v4 = vadd.f32 %v1821_v61, %v1757_v13  ;;  %v1824_v10 = vadd.f32 %v1823_v3, %v1822_v1 }
 0x174   : > { %v919_v5 = vadd.f32 %v1824_v10, %v1760_v2 }
 0x175   : > { %v1761_v11 = vpop.f32.mrb[8].mxu0 }
 0x176   : > { %v1215_v17 = vpack.c.bf16 %v919_v5, %v916_v4  ;;  %v1825_v50 = vpop.f32.mrb[8].mxu1  ;;  %v1762_v51 = vpop.f32.mrb[9].mxu0 }
 0x177   : > { %v1763_v6 = vadd.f32 %v1762_v51, %v1761_v11  ;;  %v1826_v7 = vpop.f32.mrb[9].mxu1  ;;  %v1764_v21 = vpop.f32.mrb[10].mxu0 }
 0x178   : > { %v1827_v22 = vadd.f32 %v1826_v7, %v1825_v50  ;;  %v1828_v23 = vpop.f32.mrb[10].mxu1  ;;  %1894 = vmatmul.mubr.bf16.vlgmr.msra.gmra.mrb[32].mxu0 %v1215_v17  ;;  %v1765_v8 = vpop.f32.mrb[11].mxu0 }
 0x179   : > { %v1766_v25 = vadd.f32 %v1765_v8, %v1764_v21  ;;  %v1829_v26 = vpop.f32.mrb[11].mxu1 }
 0x17a   : > { %v924_v27 = vadd.f32 %v1827_v22, %v1763_v6  ;;  %v1830_v28 = vadd.f32 %v1829_v26, %v1828_v23 }
 0x17c   : > { %v927_v32 = vadd.f32 %v1830_v28, %v1766_v25 }
 0x17d   : > { %v1767_v59 = vpop.f32.mrb[12].mxu0 }
 0x17e   : > { %v1831_v62 = vpop.f32.mrb[12].mxu1  ;;  %v1768_v15 = vpop.f32.mrb[13].mxu0  ;;  %v1216_v33 = vpack.c.bf16 %v927_v32, %v924_v27 }
 0x17f   : > { %v1769_v34 = vadd.f32 %v1768_v15, %v1767_v59  ;;  %v1832_v63 = vpop.f32.mrb[13].mxu1  ;;  %v1770_v0 = vpop.f32.mrb[14].mxu0 }
 0x180   : > { %v1833_v16 = vadd.f32 %v1832_v63, %v1831_v62  ;;  %v1834_v18 = vpop.f32.mrb[14].mxu1  ;;  %1897 = vmatprep.mubr.bf16.mxu0 %v1216_v33  ;;  %v1771_v19 = vpop.f32.mrb[15].mxu0 }
 0x181   : > { %v1772_v29 = vadd.f32 %v1771_v19, %v1770_v0  ;;  %v1835_v20 = vpop.f32.mrb[15].mxu1 }
 0x182   : > { %v932_v35 = vadd.f32 %v1833_v16, %v1769_v34  ;;  %v1836_v36 = vadd.f32 %v1835_v20, %v1834_v18 }
 0x184   : > { %v935_v37 = vadd.f32 %v1836_v36, %v1772_v29 }
 0x185   : > { %v1773_v24 = vpop.f32.mrb[16].mxu0 }
 0x186   : > { %v1837_v30 = vpop.f32.mrb[16].mxu1  ;;  %v1774_v31 = vpop.f32.mrb[17].mxu0  ;;  %v1217_v38 = vpack.c.bf16 %v935_v37, %v932_v35 }
 0x187   : > { %v1775_v39 = vadd.f32 %v1774_v31, %v1773_v24  ;;  %v1838_v40 = vpop.f32.mrb[17].mxu1  ;;  %v1776_v41 = vpop.f32.mrb[18].mxu0  ;;  %v2742_v24 = vld [vmem:[%s2837_s3] ss:$0 sm:$0xff] }
 0x188   : > { %v1839_v42 = vadd.f32 %v1838_v40, %v1837_v30  ;;  %v1840_v43 = vpop.f32.mrb[18].mxu1  ;;  %1898 = vmatmul.mubr.bf16.gmra.mrb[36].mxu0 %v1217_v38  ;;  %v1777_v44 = vpop.f32.mrb[19].mxu0 }
 0x189   : > { %v1778_v45 = vadd.f32 %v1777_v44, %v1776_v41  ;;  %v1841_v46 = vpop.f32.mrb[19].mxu1 }
 0x18a   : > { %v940_v47 = vadd.f32 %v1839_v42, %v1775_v39  ;;  %v1842_v48 = vadd.f32 %v1841_v46, %v1840_v43 }
 0x18c   : > { %v943_v54 = vadd.f32 %v1842_v48, %v1778_v45 }
 0x18d   : > { %v1779_v52 = vpop.f32.mrb[20].mxu0 }
 0x18e   : > { %v1843_v53 = vpop.f32.mrb[20].mxu1  ;;  %v1780_v9 = vpop.f32.mrb[21].mxu0  ;;  %v1218_v55 = vpack.c.bf16 %v943_v54, %v940_v47 }
 0x18f   : > { %v1781_v49 = vadd.f32 %v1780_v9, %v1779_v52  ;;  %v1844_v57 = vpop.f32.mrb[21].mxu1  ;;  %v1782_v58 = vpop.f32.mrb[22].mxu0 }
 0x190   : > { %v1845_v12 = vadd.f32 %v1844_v57, %v1843_v53  ;;  %v1846_v13 = vpop.f32.mrb[22].mxu1  ;;  %1901 = vmatprep.mubr.bf16.mxu1 %v1218_v55  ;;  %v1783_v56 = vpop.f32.mrb[23].mxu0 }
 0x191   : > { %v1784_v60 = vadd.f32 %v1783_v56, %v1782_v58  ;;  %v1847_v61 = vpop.f32.mrb[23].mxu1 }
 0x192   : > { %v948_v1 = vadd.f32 %v1845_v12, %v1781_v49  ;;  %v1848_v14 = vadd.f32 %v1847_v61, %v1846_v13 }
 0x194   : > { %v951_v2 = vadd.f32 %v1848_v14, %v1784_v60 }
 0x195   : > { %v1785_v3 = vpop.f32.mrb[24].mxu0 }
 0x196   : > { %v1219_v4 = vpack.c.bf16 %v951_v2, %v948_v1  ;;  %v1849_v10 = vpop.f32.mrb[24].mxu1  ;;  %v1786_v5 = vpop.f32.mrb[25].mxu0 }
 0x197   : > { %v1787_v11 = vadd.f32 %v1786_v5, %v1785_v3  ;;  %v1850_v17 = vpop.f32.mrb[25].mxu1  ;;  %v1788_v50 = vpop.f32.mrb[26].mxu0 }
 0x198   : > { %v1851_v51 = vadd.f32 %v1850_v17, %v1849_v10  ;;  %v1852_v6 = vpop.f32.mrb[26].mxu1  ;;  %1902 = vmatmul.mubr.bf16.vlgmr.msra.gmra.mrb[32].mxu1 %v1219_v4  ;;  %v1789_v7 = vpop.f32.mrb[27].mxu0 }
 0x199   : > { %v1790_v21 = vadd.f32 %v1789_v7, %v1788_v50  ;;  %v1853_v22 = vpop.f32.mrb[27].mxu1 }
 0x19a   : > { %v956_v23 = vadd.f32 %v1851_v51, %v1787_v11  ;;  %v1854_v8 = vadd.f32 %v1853_v22, %v1852_v6 }
 0x19c   : > { %v959_v25 = vadd.f32 %v1854_v8, %v1790_v21  ;;  %v1258_v30 = vpop.permute.xlu0 %1257 }
 0x19d   : > { %v1791_v26 = vpop.f32.mrb[28].mxu0  ;;  %v1341_v39 = vmul.f32 %v2742_v24, %v1258_v30 }
 0x19e   : > { %v1855_v27 = vpop.f32.mrb[28].mxu1  ;;  %v1792_v28 = vpop.f32.mrb[29].mxu0  ;;  %v1220_v32 = vpack.c.bf16 %v959_v25, %v956_v23 }
 0x19f   : > { %v1793_v59 = vadd.f32 %v1792_v28, %v1791_v26  ;;  %v1856_v62 = vpop.f32.mrb[29].mxu1  ;;  %v1794_v15 = vpop.f32.mrb[30].mxu0 }
 0x1a0   : > { %v1857_v33 = vadd.f32 %v1856_v62, %v1855_v27  ;;  %v1858_v34 = vpop.f32.mrb[30].mxu1  ;;  %1905 = vmatprep.mubr.bf16.mxu1 %v1220_v32  ;;  %v1795_v63 = vpop.f32.mrb[31].mxu0 }
 0x1a1   : > { %v1796_v0 = vadd.f32 %v1795_v63, %v1794_v15  ;;  %v1859_v16 = vpop.f32.mrb[31].mxu1 }
 0x1a2   : > { %v964_v18 = vadd.f32 %v1857_v33, %v1793_v59  ;;  %v1860_v19 = vadd.f32 %v1859_v16, %v1858_v34 }
 0x1a4   : > { %v967_v29 = vadd.f32 %v1860_v19, %v1796_v0  ;;  %v1263_v35 = vpop.permute.xlu1 %1262 }
 0x1a5   : > { %v1342_v41 = vmul.f32 %v2742_v24, %v1263_v35 }
 0x1a6   : > { %v1221_v20 = vpack.c.bf16 %v967_v29, %v964_v18 }
 0x1a8   : > { %1906 = vmatmul.mubr.bf16.gmra.mrb[36].mxu1 %v1221_v20 }
 0x1ad   : > { %v1268_v36 = vpop.permute.xlu1 %1267 }
 0x1ae   : > { %v1343_v31 = vmul.f32 %v2742_v24, %v1268_v36 }
 0x1b3   : > { %v1273_v37 = vpop.permute.xlu1 %1272 }
 0x1b4   : > { %v1344_v40 = vmul.f32 %v2742_v24, %v1273_v37 }
 0x1b7   : > { %v1278_v38 = vpop.permute.xlu1 %1277 }
 0x1b8   : > { %v1345_v55 = vmul.f32 %v2742_v24, %v1278_v38 }
 0x1bb   : > { %v1283_v54 = vpop.permute.xlu1 %1282 }
 0x1bc   : > { %v1346_v56 = vmul.f32 %v2742_v24, %v1283_v54 }
 0x1bf   : > { %v1288_v53 = vpop.permute.xlu1 %1287 }
 0x1c0   : > { %v1347_v9 = vmul.f32 %v2742_v24, %v1288_v53 }
 0x1c3   : > { %v1293_v49 = vpop.permute.xlu1 %1292 }
 0x1c4   : > { %v1348_v58 = vmul.f32 %v2742_v24, %v1293_v49  ;;  %v1303_v4 = vpop.permute.xlu0 %1302 }
 0x1c5   : > { %v1350_v51 = vmul.f32 %v2742_v24, %v1303_v4 }
 0x1c7   : > { %v1298_v3 = vpop.permute.xlu1 %1297 }
 0x1c8   : > { %v1349_v50 = vmul.f32 %v2742_v24, %v1298_v3 }
 0x1cb   : > { %v1308_v10 = vpop.permute.xlu1 %1307  ;;  %v1313_v5 = vpop.permute.xlu0 %1312 }
 0x1cc   : > { %v1351_v11 = vmul.f32 %v2742_v24, %v1308_v10  ;;  %v1352_v17 = vmul.f32 %v2742_v24, %v1313_v5 }
 0x1cf   : > { %v1318_v27 = vpop.permute.xlu1 %1317  ;;  %v1323_v28 = vpop.permute.xlu0 %1322 }
 0x1d0   : > { %v1353_v15 = vmul.f32 %v2742_v24, %v1318_v27  ;;  %v1354_v16 = vmul.f32 %v2742_v24, %v1323_v28 }
 0x1d3   : > { %v1328_v32 = vpop.permute.xlu1 %1327  ;;  %v1333_v59 = vpop.permute.xlu0 %1332 }
 0x1d4   : > { %v1355_v62 = vmul.f32 %v2742_v24, %v1328_v32  ;;  %v1356_v34 = vmul.f32 %v2742_v24, %v1333_v59 }
 0x24b   : > { %v1895_v42 = vpop.f32.mrb[32].mxu0 }
 0x24c   : > { %v1448_v43 = vadd.f32 %v1895_v42, %v1343_v31  ;;  %v1439_v44 = vpop.f32.mrb[33].mxu0 }
 0x24d   : > { %v1440_v45 = vadd.f32 %v1439_v44, %v1341_v39  ;;  %v1896_v46 = vpop.f32.mrb[34].mxu0 }
 0x24e   : > { %1504 = vst [vmem:[%s2749_s12 + $0x10] sm:$0xff] %v1448_v43  ;;  %v1451_v47 = vadd.f32 %v1896_v46, %v1344_v40  ;;  %v1442_v48 = vpop.f32.mrb[35].mxu0 }
 0x24f   : > { %1502 = vst [vmem:[%s2749_s12] sm:$0xff] %v1440_v45  ;;  %v1443_v52 = vadd.f32 %v1442_v48, %v1342_v41 }
 0x250   : > { %1505 = vst [vmem:[%s2749_s12 + $0x18] sm:$0xff] %v1451_v47 }
 0x251   : > { %1503 = vst [vmem:[%s2749_s12 + $0x8] sm:$0xff] %v1443_v52 }
 0x25b   : > { %v1899_v57 = vpop.f32.mrb[36].mxu0 }
 0x25c   : > { %v1464_v12 = vadd.f32 %v1899_v57, %v1347_v9  ;;  %v1455_v13 = vpop.f32.mrb[37].mxu0 }
 0x25d   : > { %v1456_v60 = vadd.f32 %v1455_v13, %v1345_v55  ;;  %v1900_v61 = vpop.f32.mrb[38].mxu0 }
 0x25e   : > { %1508 = vst [vmem:[%s2749_s12 + $0x30] sm:$0xff] %v1464_v12  ;;  %v1467_v1 = vadd.f32 %v1900_v61, %v1348_v58  ;;  %v1458_v14 = vpop.f32.mrb[39].mxu0 }
 0x25f   : > { %1506 = vst [vmem:[%s2749_s12 + $0x20] sm:$0xff] %v1456_v60  ;;  %v1459_v2 = vadd.f32 %v1458_v14, %v1346_v56 }
 0x260   : > { %1509 = vst [vmem:[%s2749_s12 + $0x38] sm:$0xff] %v1467_v1 }
 0x261   : > { %1507 = vst [vmem:[%s2749_s12 + $0x28] sm:$0xff] %v1459_v2 }
 0x26b   : > { %v1903_v6 = vpop.f32.mrb[32].mxu1 }
 0x26c   : > { %v1480_v7 = vadd.f32 %v1903_v6, %v1351_v11  ;;  %v1471_v21 = vpop.f32.mrb[33].mxu1 }
 0x26d   : > { %v1472_v22 = vadd.f32 %v1471_v21, %v1349_v50  ;;  %v1904_v23 = vpop.f32.mrb[34].mxu1 }
 0x26e   : > { %1512 = vst [vmem:[%s2749_s12 + $0x50] sm:$0xff] %v1480_v7  ;;  %v1483_v8 = vadd.f32 %v1904_v23, %v1352_v17  ;;  %v1474_v25 = vpop.f32.mrb[35].mxu1 }
 0x26f   : > { %1510 = vst [vmem:[%s2749_s12 + $0x40] sm:$0xff] %v1472_v22  ;;  %v1475_v26 = vadd.f32 %v1474_v25, %v1350_v51 }
 0x270   : > { %1513 = vst [vmem:[%s2749_s12 + $0x58] sm:$0xff] %v1483_v8 }
 0x271   : > { %1511 = vst [vmem:[%s2749_s12 + $0x48] sm:$0xff] %v1475_v26 }
 0x27b   : > { %v1907_v33 = vpop.f32.mrb[36].mxu1 }
 0x27c   : > { %v1496_v63 = vadd.f32 %v1907_v33, %v1355_v62  ;;  %v1487_v0 = vpop.f32.mrb[37].mxu1 }
 0x27d   : > { %v1488_v18 = vadd.f32 %v1487_v0, %v1353_v15  ;;  %v1908_v19 = vpop.f32.mrb[38].mxu1 }
 0x27e   : > { %1516 = vst [vmem:[%s2749_s12 + $0x70] sm:$0xff] %v1496_v63  ;;  %v1499_v29 = vadd.f32 %v1908_v19, %v1356_v34  ;;  %v1490_v20 = vpop.f32.mrb[39].mxu1 }
 0x27f   : > { %1514 = vst [vmem:[%s2749_s12 + $0x60] sm:$0xff] %v1488_v18  ;;  %v1491_v35 = vadd.f32 %v1490_v20, %v1354_v16 }
 0x280   : > { %1517 = vst [vmem:[%s2749_s12 + $0x78] sm:$0xff] %v1499_v29 }
 0x281   : > { %1515 = vst [vmem:[%s2749_s12 + $0x68] sm:$0xff] %v1491_v35 }
 0x282   : > { %2189 = shalt.err (!%p2186_p5)
}
 0x283   : > { %s2190_s10 = scalar_lea.hbm %s2781_s24, 2048  ;;  %s2194_s25 = scalar_lea.hbm %s2838_s4, 8192 }
 0x284   : > { %p2191_p9 = scmp.ne.s32.totalorder %s2781_s24, %s2190_s10  ;;  %p2195_p3 = scmp.lt.u32.totalorder %s2781_s24, %s2838_s4 }
 0x285   : > { %p2196_p7 = scmp.lt.u32.totalorder %s2194_s25, %s2190_s10  ;;  %p2198_p1 = scmp.lt.u32.totalorder %s2190_s10, %s2781_s24 }
 0x286   : > { %p2192_p12 = pnand %p2191_p9, %p2426_p8 }
 0x287   : > { %p2197_p10 = por %p2196_p7, %p2195_p3 }
 0x288   : > { %p2193_p11 = pneg %p2192_p12 }
 0x289   : > { %p2199_p2 = por %p2198_p1, %p2197_p10 }
 0x28b   : > { %p2200_p4 = pnand %p2199_p2, %p2193_p11 }
 0x28d   : > { %2203 = shalt.err (!%p2200_p4)
}
 0x28e   : > { %s2274_s13 = smov 128   ;;  %s2275_s14 = smov 8  }
 0x28f   : > { %1935 = dma.vmem_to_hbm [thread:$0]  (%p2426_p8), %s2783_s29, 2048, %s2781_s24, %s1519_s18, %s2274_s13, %s2274_s13, %s2275_s14  }
 0x290 PF: > { %p1957_p6 = scmp.ge.s32.totalorder %s2262_s20, 2  ;;  %s1547_s11 = sand.u32 1, %s2242_s15  }
 0x291   : > { %p2855_p13 = scmp.ne.s32.totalorder %s2846_s26, 0  ;;  %s1548_s7 = scalar_lea.sflag [#allocation6], %s1547_s11 }
 0x293   : > { %p1949_p0 = pnand %p1957_p6, %p2855_p13 }
 0x295   : > { %2237 = dma.done.wait (!%p1949_p0), %s1548_s7, 2048  }
 0x296   : > { %2239 = vsyncadd (!%p1949_p0), %s1548_s7, 4294965248  ;;  %s21_s20 = sadd.s32 1, %s2262_s20   ;;  %s2856_s15 = smov %s2246_s16 }
 0x297   : > { %p18_p5 = scmp.ge.s32.totalorder %s21_s20, 6   ;;  %s2857_s16 = smov %s2250_s17 }
 0x298   : > { %s2858_s17 = smov %s2435_s22  ;;  %s2859_s18 = smov %s2258_s19 }
 0x299   : > { %s2860_s19 = smov %s2862_s5  ;;  %20 = sbr.rel (!%p18_p5) target bundleno = 7 (0x7), region = 98 }
 0x2a0   :  { %1553 = vsyncpa [#allocation5], 1 }
 0x2a1   :  { %1555 = vsyncpa [#allocation5 + $0x1], 1 }
 0x2a2   :  { %1556 = vsyncpa [#allocation8], 1 }
 0x2a3   :  { %1557 = vsyncpa [#allocation6], 1 }
 0x2a4   :  { %1559 = vsyncpa [#allocation6 + $0x1], 1 }

// kernel: tpu_custom_call.1
= control target key start
LH: loop header
LB: loop body
LE: loop exit
PB: predicated region body
PF: predicated region fallthrough
CT: control target
= control target key end

     0   :  { %9 = vsyncpa [#allocation5], 0  ;;  %s2834_s0 = inlined_call_operand.hbm [shape: bf16[512,512], index: 0, kind: input, shape index: {}]   ;;  %s2835_s1 = inlined_call_operand.hbm [shape: bf16[512,128], index: 1, kind: input, shape index: {}]   ;;  %s2836_s2 = inlined_call_operand.hbm [shape: bf16[128,128], index: 2, kind: input, shape index: {}]   ;;  %s2837_s3 = inlined_call_operand.vmem [shape: f32[1,128], index: 3, kind: input, shape index: {}]   ;;  %s2838_s4 = inlined_call_operand.hbm [shape: f32[512,128], index: 4, kind: output, shape index: {}]  }
   0x1   :  { %11 = vsyncpa [#allocation5 + $0x1], 0 }
   0x2   :  { %12 = vsyncpa [#allocation8], 0 }
   0x3   :  { %13 = vsyncpa [#allocation6], 0 }
   0x4   :  { %15 = vsyncpa [#allocation6 + $0x1], 0  ;;  %s2301_s15 = smov 0   ;;  %s2303_s16 = smov 0  }
   0x5   :  { %s2305_s17 = smov 0   ;;  %s2307_s18 = smov 0  }
   0x6   :  { %s2309_s19 = smov 0   ;;  %s2311_s20 = smov 0  }
   0x7 LB: > { %s1637_s21 = sadd.s32 4294967295, %s2262_s20   ;;  %s1638_s22 = sadd.s32 4294967294, %s2262_s20   ;;  %s2262_s20 = sphi %s2311_s20, %s21_s20   ;;  %s2258_s19 = sphi %s2309_s19, %s2860_s19   ;;  %s2254_s18 = sphi %s2307_s18, %s2859_s18   ;;  %s2250_s17 = sphi %s2305_s17, %s2858_s17   ;;  %s2246_s16 = sphi %s2303_s16, %s2857_s16   ;;  %s2242_s15 = sphi %s2301_s15, %s2856_s15  }
   0x8   : > { %p55_p0 = scmp.ne.s32.totalorder %s2246_s16, %s2242_s15  ;;  %p2335_p1 = scmp.eq.s32.totalorder %s1637_s21, 0 }
   0x9   : > { %p2339_p2 = scmp.eq.s32.totalorder %s1637_s21, 3  ;;  %p153_p3 = scmp.eq.s32.totalorder %s1638_s22, 3 }
   0xa   : > { %s2843_s23 = scalar_select %p2335_p1, 1, 0 }
   0xb   : > { %s2844_s24 = scalar_select %p2339_p2, 1, 0 }
   0xc   : > { %p2345_p4 = por %p2335_p1, %p55_p0  ;;  %p1639_p5 = scmp.ge.s32.totalorder %s2262_s20, 1 }
   0xd   : > { %p2350_p6 = por %p153_p3, %p55_p0  ;;  %p160_p7 = scmp.lt.s32.totalorder %s2262_s20, 5 }
   0xe   : > { %s2845_s25 = scalar_select %p2345_p4, 1, 0 }
   0xf   : > { %s2846_s26 = scalar_select %p2350_p6, 1, 0 }
  0x10   : > { %p2355_p8 = pnand %p1639_p5, %p160_p7  ;;  %s2264_s28 = smov [#allocation7]  }
  0x11   : > { %s175_s29 = sshll.u32 %s2264_s28, 4  ;;  %s2265_s5 = smov [#allocation9]   ;;  %s176_s29 = int_to_ptr.vmem [resolvable:$true] %s175_s29 }
  0x12   : > { %s2847_s27 = scalar_select %p2355_p8, 1, 0 }
  0x13   : > { %p1937_p9 = pneg %p2355_p8  ;;  %s188_s6 = sshll.u32 %s2265_s5, 4  ;;  %s2367_s6 = int_to_ptr.vmem [resolvable:$true] %s188_s6 }
  0x14   : > { %s2090_s9 = scalar_lea.hbm %s2835_s1, 4096 }
  0x15   : > { %p2363_p10 = pnand %p1937_p9, %p2335_p1  ;;  %p2091_p11 = scmp.ne.s32.totalorder %s2835_s1, %s2090_s9 }
  0x16   : > { %p2097_p3 = scmp.lt.u32.totalorder %s2090_s9, %s2835_s1 }
  0x17   : > { %p2092_p12 = pneg %p2363_p10 }
  0x19   : > { %p2093_p13 = pnand %p2092_p12, %p2091_p11 }
  0x1b   : > { %p2094_p0 = pneg %p2093_p13 }
  0x1d   : > { %p2099_p5 = pnand %p2097_p3, %p2094_p0 }
  0x1f   : > { %2102 = shalt.err (!%p2099_p5)
}
  0x20   : > { %s2103_s14 = scalar_lea.vmem %s176_s29, 4096  ;;  %p2111_p1 = scmp.lt.s32.totalorder %s176_s29, %s176_s29 }
  0x21   : > { %p2104_p7 = scmp.ne.s32.totalorder %s176_s29, %s2103_s14  ;;  %p2112_p4 = scmp.lt.s32.totalorder %s2103_s14, %s2103_s14 }
  0x23   : > { %p2106_p9 = pnand %p2104_p7, %p2092_p12  ;;  %p2113_p8 = por %p2112_p4, %p2111_p1 }
  0x25   : > { %p2107_p6 = pneg %p2106_p9 }
  0x27   : > { %p2114_p2 = pnand %p2113_p8, %p2107_p6 }
  0x29   : > { %2117 = shalt.err (!%p2114_p2)
}
  0x2a   : > { %s2266_s21 = smov 64   ;;  %s2267_s22 = smov 4  }
  0x2b   : > { %1940 = dma.hbm_to_vmem [thread:$0]  (!%p2363_p10), %s2835_s1, 4096, %s176_s29, [#allocation8], %s2266_s21, %s2266_s21, %s2267_s22  }
  0x2c   : > { %s2118_s9 = scalar_lea.hbm %s2836_s2, 1024 }
  0x2d   : > { %p2119_p11 = scmp.ne.s32.totalorder %s2836_s2, %s2118_s9  ;;  %p2125_p4 = scmp.lt.u32.totalorder %s2118_s9, %s2836_s2 }
  0x2f   : > { %p2121_p1 = pnand %p2119_p11, %p2092_p12 }
  0x31   : > { %p2122_p2 = pneg %p2121_p1 }
  0x33   : > { %p2127_p6 = pnand %p2125_p4, %p2122_p2 }
  0x35   : > { %2130 = shalt.err (!%p2127_p6)
}
  0x36   : > { %s2131_s29 = scalar_lea.vmem %s2367_s6, 1024  ;;  %p2139_p3 = scmp.lt.s32.totalorder %s2367_s6, %s2367_s6 }
  0x37   : > { %p2132_p8 = scmp.ne.s32.totalorder %s2367_s6, %s2131_s29  ;;  %p2140_p5 = scmp.lt.s32.totalorder %s2131_s29, %s2131_s29 }
  0x39   : > { %p2134_p13 = pnand %p2132_p8, %p2092_p12  ;;  %p2141_p7 = por %p2140_p5, %p2139_p3 }
  0x3b   : > { %p2135_p0 = pneg %p2134_p13 }
  0x3d   : > { %p2142_p9 = pnand %p2141_p7, %p2135_p0 }
  0x3f   : > { %2145 = shalt.err (!%p2142_p9)
}
  0x40   : > { %1943 = dma.hbm_to_vmem [thread:$0]  (!%p2363_p10), %s2836_s2, 1024, %s2367_s6, [#allocation8], %s2266_s21, %s2266_s21, %s2267_s22  }
  0x41   : > { %s33_s5 = sadd.s32 1, %s2258_s19  ;;  %s42_s7 = sadd.s32 1, %s2250_s17 }
  0x42   : > { %p35_p12 = scmp.ge.s32.totalorder %s33_s5, 4  ;;  %p49_p11 = scmp.ne.s32.totalorder %s2250_s17, %s2246_s16 }
  0x43   : > { %p50_p1 = scmp.eq.s32.totalorder %s2262_s20, 0  ;;  %p1954_p2 = scmp.lt.s32.totalorder %s2262_s20, 4 }
  0x44   : > { %s2862_s5 = smov (%p35_p12, %s33_s5), 0  ;;  %p2849_p6 = scmp.ne.s32.totalorder %s2844_s24, 0 }
  0x45   : > { %p51_p4 = por %p50_p1, %p49_p11  ;;  %s37_s8 = ssub.s32 %s2258_s19, %s2862_s5 }
  0x46   : > { %p2426_p8 = por %p2849_p6, %p49_p11  ;;  %s205_s9 = sand.u32 1, %s2250_s17  }
  0x47   : > { %p40_p13 = scmp.eq.s32.totalorder %s37_s8, 0  ;;  %s1643_s6 = sshll.u32 %s205_s9, 8 }
  0x48   : > { %s1731_s21 = sshll.u32 %s2258_s19, 12  ;;  %s209_s24 = scalar_lea.vmem [#allocation4], %s1643_s6 }
  0x49   : > { %s2435_s22 = scalar_select %p40_p13, %s2250_s17, %s42_s7  }
  0x4a   : > { %s2440_s12 = scalar_lea.hbm %s2834_s0, %s1731_s21  ;;  %s219_s13 = sshll.u32 %s209_s24, 4  ;;  %s2448_s13 = int_to_ptr.vmem [resolvable:$true] %s219_s13 }
  0x4b   : > { %p2444_p10 = pnand %p1954_p2, %p51_p4  ;;  %s2450_s14 = scalar_lea.sflag [#allocation5], %s205_s9 }
  0x4c   : > { %s2146_s28 = scalar_lea.hbm %s2440_s12, 4096  ;;  %s2151_s6 = scalar_lea.hbm %s2834_s0, 16384 }
  0x4d   : > { %p2147_p0 = scmp.ne.s32.totalorder %s2440_s12, %s2146_s28  ;;  %p2148_p3 = pneg %p2444_p10 }
  0x4e   : > { %p2152_p9 = scmp.lt.u32.totalorder %s2440_s12, %s2834_s0  ;;  %p2153_p12 = scmp.lt.u32.totalorder %s2151_s6, %s2146_s28 }
  0x4f   : > { %p2149_p5 = pnand %p2148_p3, %p2147_p0  ;;  %p2155_p1 = scmp.lt.u32.totalorder %s2146_s28, %s2440_s12 }
  0x50   : > { %p2154_p11 = por %p2153_p12, %p2152_p9 }
  0x51   : > { %p2150_p7 = pneg %p2149_p5 }
  0x52   : > { %p2156_p2 = por %p2155_p1, %p2154_p11 }
  0x54   : > { %p2157_p4 = pnand %p2156_p2, %p2150_p7 }
  0x56   : > { %2160 = shalt.err (!%p2157_p4)
}
  0x57   : > { %s2161_s9 = scalar_lea.vmem %s2448_s13, 4096  ;;  %s2268_s11 = smov [#allocation4]  }
  0x58   : > { %p2162_p6 = scmp.ne.s32.totalorder %s2448_s13, %s2161_s9  ;;  %s2166_s24 = sshll.u32 %s2268_s11, 4  ;;  %s2167_s24 = int_to_ptr.vmem [resolvable:$false] %s2166_s24 }
  0x59   : > { %s2168_s7 = scalar_lea.vmem %s2167_s24, 8192  ;;  %p2169_p5 = scmp.lt.s32.totalorder %s2448_s13, %s2167_s24 }
  0x5a   : > { %p2164_p13 = pnand %p2162_p6, %p2148_p3  ;;  %p2170_p9 = scmp.lt.s32.totalorder %s2168_s7, %s2161_s9 }
  0x5c   : > { %p2165_p0 = pneg %p2164_p13  ;;  %p2171_p12 = por %p2170_p9, %p2169_p5 }
  0x5e   : > { %p2172_p11 = pnand %p2171_p12, %p2165_p0 }
  0x60   : > { %2175 = shalt.err (!%p2172_p11)
}
  0x61   : > { %s2269_s28 = smov 256   ;;  %s2270_s8 = smov 16  }
  0x62   : > { %1947 = dma.hbm_to_vmem [thread:$0]  (!%p2444_p10), %s2440_s12, 4096, %s2448_s13, %s2450_s14, %s2269_s28, %s2269_s28, %s2270_s8  }
  0x63   : > { %p2852_p3 = scmp.ne.s32.totalorder %s2847_s27, 0 }
  0x64   : > { %s2481_s6 = sand.u32 (!%p2852_p3), 1, %s2246_s16   ;;  %p2853_p7 = scmp.ne.s32.totalorder (!%p2852_p3), %s2845_s25, 0 }
  0x65   : > { %231 = sbr.rel (%p2852_p3) target bundleno = 656 (0x290), region = 36  ;;  %s1648_s21 = sshll.u32 (!%p2852_p3), %s2481_s6, 8 }
  0x66   : > { %s234_s10 = scalar_lea.sflag (!%p2852_p3), [#allocation5], %s2481_s6  ;;  %s2485_s9 = scalar_lea.vmem (!%p2852_p3), [#allocation4], %s1648_s21 }
  0x6c   : > { %2229 = dma.done.wait (%p2853_p7), %s234_s10, 4096  }
  0x6d   : > { %2231 = vsyncadd (%p2853_p7), %s234_s10, 4294963200  ;;  %p2854_p10 = scmp.ne.s32.totalorder %s2843_s23, 0 }
  0x6f   : > { %2233 = dma.done.wait (%p2854_p10), [#allocation8], 5120  }
  0x70   : > { %2235 = vsyncadd (%p2854_p10), [#allocation8], 4294962176  ;;  %v2018_v0 = vld [vmem:[#allocation7 + $0x40] sm:$0xff]   ;;  %v2022_v4 = vld [vmem:[#allocation7 + $0x48] sm:$0xff]   ;;  %vm295_vm0 = vcmask 7168   ;;  %s1651_s27 = sshll.u32 %s2481_s6, 7 }
  0x71   : > { %v2019_v1 = vld [vmem:[#allocation7 + $0xc0] sm:$0xff]   ;;  %1733 = vmatprep.subr.bf16.mxu0 %v2018_v0  ;;  %v2023_v5 = vld [vmem:[#allocation7 + $0xc8] sm:$0xff]   ;;  %v2026_v8 = vld [vmem:[#allocation7 + $0x50] sm:$0xff]   ;;  %s2749_s12 = scalar_lea.vmem [#allocation10], %s1651_s27  ;;  %s1732_s13 = sshll.u32 %s2254_s18, 11 }
  0x72   : > { %v2020_v2 = vld [vmem:[#allocation7] sm:$0xff]   ;;  %1797 = vmatprep.subr.bf16.mxu1 %v2019_v1  ;;  %v2024_v6 = vld [vmem:[#allocation7 + $0x8] sm:$0xff]   ;;  %v2027_v9 = vld [vmem:[#allocation7 + $0xd0] sm:$0xff]   ;;  %s1532_s29 = sshll.u32 %s2749_s12, 4  ;;  %s2781_s24 = scalar_lea.hbm %s2838_s4, %s1732_s13  ;;  %s2783_s29 = int_to_ptr.vmem [resolvable:$true] %s1532_s29 }
  0x73   : > { %v2021_v3 = vld [vmem:[#allocation7 + $0x80] sm:$0xff]   ;;  %1734 = vmatpush3.bf16.msra.mxu0 %v2020_v2  ;;  %v2025_v7 = vld [vmem:[#allocation7 + $0x88] sm:$0xff]   ;;  %v2028_v10 = vld [vmem:[#allocation7 + $0x10] sm:$0xff]   ;;  %s1519_s18 = scalar_lea.sflag [#allocation6], %s2481_s6  ;;  %s2176_s7 = scalar_lea.vmem %s2783_s29, 2048 }
  0x74   : > { %1798 = vmatpush3.bf16.msra.mxu1 %v2021_v3  ;;  %1735 = vmatprep.subr.bf16.mxu0 %v2022_v4  ;;  %v2029_v11 = vld [vmem:[#allocation7 + $0x90] sm:$0xff]   ;;  %v2030_v12 = vld [vmem:[#allocation7 + $0x58] sm:$0xff]   ;;  %v2034_v16 = vld [vmem:[#allocation7 + $0x60] sm:$0xff]   ;;  %p2177_p1 = scmp.ne.s32.totalorder %s2783_s29, %s2176_s7  ;;  %s2273_s28 = smov [#allocation10]  }
  0x75   : > { %1799 = vmatprep.subr.bf16.mxu1 %v2023_v5  ;;  %v2031_v13 = vld [vmem:[#allocation7 + $0xd8] sm:$0xff]   ;;  %v2035_v17 = vld [vmem:[#allocation7 + $0xe0] sm:$0xff]   ;;  %v2038_v20 = vld [vmem:[#allocation7 + $0x68] sm:$0xff]   ;;  %s2180_s8 = sshll.u32 %s2273_s28, 4  ;;  %s2181_s8 = int_to_ptr.vmem [resolvable:$false] %s2180_s8 }
  0x76   : > { %v2032_v14 = vld [vmem:[#allocation7 + $0x18] sm:$0xff]   ;;  %v2036_v18 = vld [vmem:[#allocation7 + $0x20] sm:$0xff]   ;;  %v2039_v21 = vld [vmem:[#allocation7 + $0xe8] sm:$0xff]   ;;  %p2178_p2 = pnand %p2177_p1, %p2426_p8  ;;  %s2182_s21 = scalar_lea.vmem %s2181_s8, 4096 }
  0x77   : > { %1736 = vmatpush3.bf16.msra.mxu0 %v2024_v6  ;;  %v2033_v15 = vld [vmem:[#allocation7 + $0x98] sm:$0xff]   ;;  %v2037_v19 = vld [vmem:[#allocation7 + $0xa0] sm:$0xff]   ;;  %v2040_v22 = vld [vmem:[#allocation7 + $0x28] sm:$0xff]   ;;  %p2183_p6 = scmp.lt.s32.totalorder %s2783_s29, %s2181_s8  ;;  %p2184_p13 = scmp.lt.s32.totalorder %s2182_s21, %s2176_s7 }
  0x78   : > { %1800 = vmatpush3.bf16.msra.mxu1 %v2025_v7  ;;  %1737 = vmatprep.subr.bf16.mxu0 %v2026_v8  ;;  %v2041_v23 = vld [vmem:[#allocation7 + $0xa8] sm:$0xff]   ;;  %v2042_v24 = vld [vmem:[#allocation7 + $0x70] sm:$0xff]   ;;  %v2046_v28 = vld [vmem:[#allocation7 + $0x78] sm:$0xff]   ;;  %p2179_p4 = pneg %p2178_p2 }
  0x79   : > { %1801 = vmatprep.subr.bf16.mxu1 %v2027_v9  ;;  %v2043_v25 = vld [vmem:[#allocation7 + $0xf0] sm:$0xff]   ;;  %v2047_v29 = vld [vmem:[#allocation7 + $0xf8] sm:$0xff]   ;;  %v312_v32 = vld [vmem:[%s2485_s9] sm:$0xff]  ;;  %p2185_p0 = por %p2184_p13, %p2183_p6 }
  0x7a   : > { %v2044_v26 = vld [vmem:[#allocation7 + $0x30] sm:$0xff]   ;;  %v2048_v30 = vld [vmem:[#allocation7 + $0x38] sm:$0xff]   ;;  %v313_v34 = vld [vmem:[%s2485_s9 + $0x8] sm:$0xff]  ;;  %v1018_v46 = vunpack.c.l.bf16 %v312_v32  ;;  %v1019_v47 = vunpack.c.h.bf16 %v312_v32 }
  0x7b   : > { %1738 = vmatpush3.bf16.msra.mxu0 %v2028_v10  ;;  %v2045_v27 = vld [vmem:[#allocation7 + $0xb0] sm:$0xff]   ;;  %v2049_v31 = vld [vmem:[#allocation7 + $0xb8] sm:$0xff]   ;;  %v2502_v38 = vld [vmem:[%s2485_s9 + $0x20] sm:$0xff]  ;;  %v1020_v54 = vunpack.c.l.bf16 %v313_v34  ;;  %v1021_v60 = vunpack.c.h.bf16 %v313_v34  ;;  %p2186_p5 = pnand %p2185_p0, %p2179_p4 }
  0x7c   : > { %1802 = vmatpush3.bf16.msra.mxu1 %v2029_v11  ;;  %1739 = vmatprep.subr.bf16.mxu0 %v2030_v12  ;;  %v314_v33 = vld [vmem:[%s2485_s9 + $0x10] sm:$0xff]  ;;  %v2499_v36 = vld [vmem:[%s2485_s9 + $0x18] sm:$0xff]  ;;  %v2512_v43 = vld [vmem:[%s2485_s9 + $0x28] sm:$0xff]  ;;  %v1082_v1 = vadd.f32 %v1019_v47, %v1018_v46 }
  0x7d   : > { %1803 = vmatprep.subr.bf16.mxu1 %v2031_v13  ;;  %v1653_v35 = vcombine.high %v312_v32, %v314_v33  ;;  %v1652_v37 = vcombine.low %v312_v32, %v314_v33  ;;  %v2505_v39 = vld [vmem:[%s2485_s9 + $0x30] sm:$0xff]  ;;  %v1655_v40 = vcombine.high %v313_v34, %v2499_v36  ;;  %v1654_v41 = vcombine.low %v313_v34, %v2499_v36  ;;  %v2515_v44 = vld [vmem:[%s2485_s9 + $0x38] sm:$0xff]  ;;  %v2520_v48 = vld [vmem:[%s2485_s9 + $0x40] sm:$0xff] }
  0x7e   : > { %v1657_v42 = vcombine.high %v2502_v38, %v2505_v39  ;;  %v1659_v45 = vcombine.high %v2512_v43, %v2515_v44  ;;  %v2523_v49 = vld [vmem:[%s2485_s9 + $0x50] sm:$0xff]  ;;  %v2526_v50 = vld [vmem:[%s2485_s9 + $0x48] sm:$0xff]  ;;  %v2529_v51 = vld [vmem:[%s2485_s9 + $0x58] sm:$0xff]  ;;  %v1656_v55 = vcombine.low %v2502_v38, %v2505_v39  ;;  %v1658_v56 = vcombine.low %v2512_v43, %v2515_v44 }
  0x7f   : > { %1740 = vmatpush3.bf16.msra.mxu0 %v2032_v14  ;;  %808 = vmatprep.mubr.bf16.mxu0 %v1653_v35  ;;  %v2532_v52 = vld [vmem:[%s2485_s9 + $0x60] sm:$0xff]  ;;  %v2535_v53 = vld [vmem:[%s2485_s9 + $0x70] sm:$0xff]  ;;  %v2542_v57 = vld [vmem:[%s2485_s9 + $0x68] sm:$0xff]  ;;  %v1661_v61 = vcombine.high %v2520_v48, %v2523_v49  ;;  %v1022_v2 = vunpack.c.l.bf16 %v314_v33  ;;  %v1023_v3 = vunpack.c.h.bf16 %v314_v33  ;;  %v1663_v4 = vcombine.high %v2526_v50, %v2529_v51 }
  0x80   : > { %1804 = vmatpush3.bf16.msra.mxu1 %v2033_v15  ;;  %1741 = vmatprep.subr.bf16.mxu0 %v2034_v16  ;;  %v2545_v58 = vld [vmem:[%s2485_s9 + $0x78] sm:$0xff]  ;;  %v2548_v59 = vld [vmem:[%s2485_s9 + $0x80] sm:$0xff]  ;;  %v2553_v62 = vld [vmem:[%s2485_s9 + $0x90] sm:$0xff]  ;;  %v1660_v5 = vcombine.low %v2520_v48, %v2523_v49  ;;  %v1662_v6 = vcombine.low %v2526_v50, %v2529_v51  ;;  %v1665_v7 = vcombine.high %v2532_v52, %v2535_v53  ;;  %v1024_v11 = vunpack.c.l.bf16 %v2499_v36 }
  0x81   : > { %1805 = vmatprep.subr.bf16.mxu1 %v2035_v17  ;;  %905 = vmatprep.mubr.bf16.mxu1 %v1655_v40  ;;  %v2556_v63 = vld [vmem:[%s2485_s9 + $0x88] sm:$0xff]  ;;  %v2559_v0 = vld [vmem:[%s2485_s9 + $0x98] sm:$0xff]  ;;  %v1667_v8 = vcombine.high %v2542_v57, %v2545_v58  ;;  %v1664_v9 = vcombine.low %v2532_v52, %v2535_v53  ;;  %v1083_v10 = vadd.f32 %v1082_v1, %v1020_v54  ;;  %v1034_v32 = vunpack.c.l.bf16 %v2520_v48 }
  0x82   : > { %v1666_v12 = vcombine.low %v2542_v57, %v2545_v58  ;;  %v1669_v13 = vcombine.high %v2548_v59, %v2553_v62  ;;  %v1671_v14 = vcombine.high %v2556_v63, %v2559_v0  ;;  %v1668_v15 = vcombine.low %v2548_v59, %v2553_v62 }
  0x83   : > { %1742 = vmatpush3.bf16.msra.mxu0 %v2036_v18  ;;  %v1670_v16 = vcombine.low %v2556_v63, %v2559_v0  ;;  %v1084_v17 = vadd.f32 %v1083_v10, %v1021_v60  ;;  %v1025_v18 = vunpack.c.h.bf16 %v2499_v36  ;;  %v1035_v33 = vunpack.c.h.bf16 %v2520_v48 }
  0x84   : > { %1806 = vmatpush3.bf16.msra.mxu1 %v2037_v19  ;;  %1743 = vmatprep.subr.bf16.mxu0 %v2038_v20  ;;  %v1087_v19 = vadd.f32 %v1023_v3, %v1022_v2  ;;  %v2082_v20 = vld [vmem:[#allocation9] sm:$0xff]   ;;  %v1036_v36 = vunpack.c.l.bf16 %v2526_v50  ;;  %v1038_v40 = vunpack.c.l.bf16 %v2523_v49  ;;  %v1043_v54 = vunpack.c.h.bf16 %v2532_v52 }
  0x85   : > { %1807 = vmatprep.subr.bf16.mxu1 %v2039_v21  ;;  %v1026_v21 = vunpack.c.l.bf16 %v2502_v38  ;;  %1085 = vadd.xlane.f32.xlu0 %v1084_v17  ;;  %v1046_v60 = vunpack.c.l.bf16 %v2535_v53  ;;  %v1047_v3 = vunpack.c.h.bf16 %v2535_v53  ;;  %v1048_v10 = vunpack.c.l.bf16 %v2545_v58 }
  0x86   : > { %v1051_v17 = vunpack.c.h.bf16 %v2548_v59 }
  0x87   : > { %1744 = vmatpush3.bf16.msra.mxu0 %v2040_v22  ;;  %v1027_v22 = vunpack.c.h.bf16 %v2502_v38 }
  0x88   : > { %1808 = vmatpush3.bf16.msra.mxu1 %v2041_v23  ;;  %1745 = vmatprep.subr.bf16.mxu0 %v2042_v24  ;;  %v1028_v23 = vunpack.c.l.bf16 %v2512_v43  ;;  %v1029_v24 = vunpack.c.h.bf16 %v2512_v43  ;;  %v1040_v43 = vunpack.c.l.bf16 %v2529_v51 }
  0x89   : > { %1809 = vmatprep.subr.bf16.mxu1 %v2043_v25  ;;  %v1088_v25 = vadd.f32 %v1087_v19, %v1024_v11  ;;  %v1050_v11 = vunpack.c.l.bf16 %v2548_v59  ;;  %v2625_v19 = vld [vmem:[%s2485_s9 + $0xb0] sm:$0xff] }
  0x8b   : > { %1746 = vmatpush3.bf16.msra.mxu0 %v2044_v26  ;;  %v1030_v26 = vunpack.c.l.bf16 %v2505_v39  ;;  %v1089_v34 = vadd.f32 %v1088_v25, %v1025_v18  ;;  %v2621_v18 = vld [vmem:[%s2485_s9 + $0xa0] sm:$0xff] }
  0x8c   : > { %1810 = vmatpush3.bf16.msra.mxu1 %v2045_v27  ;;  %1747 = vmatprep.subr.bf16.mxu0 %v2046_v28  ;;  %v1031_v27 = vunpack.c.h.bf16 %v2505_v39  ;;  %v1032_v28 = vunpack.c.l.bf16 %v2515_v44  ;;  %v1102_v39 = vadd.f32 %v1035_v33, %v1034_v32  ;;  %v1672_v59 = vcombine.low %v2621_v18, %v2625_v19 }
  0x8d   : > { %1811 = vmatprep.subr.bf16.mxu1 %v2047_v29  ;;  %v2083_v29 = vld [vmem:[#allocation9 + $0x8] sm:$0xff]   ;;  %1090 = vadd.xlane.f32.xlu0 %v1089_v34 }
  0x8e   : > { %v1097_v35 = vadd.f32 %v1031_v27, %v1030_v26  ;;  %v1103_v47 = vadd.f32 %v1102_v39, %v1036_v36  ;;  %v2651_v39 = vld [vmem:[%s2485_s9 + $0xe8] sm:$0xff] }
  0x8f   : > { %1748 = vmatpush3.bf16.msra.mxu0 %v2048_v30  ;;  %v1092_v30 = vadd.f32 %v1027_v22, %v1026_v21  ;;  %v1053_v21 = vunpack.c.h.bf16 %v2556_v63  ;;  %v1122_v22 = vadd.f32 %v1051_v17, %v1050_v11 }
  0x90   : > { %1812 = vmatpush3.bf16.msra.mxu1 %v2049_v31  ;;  %v1033_v31 = vunpack.c.h.bf16 %v2515_v44  ;;  %1877 = vmatprep.subr.bf16.mxu0 %v2082_v20  ;;  %v1041_v44 = vunpack.c.h.bf16 %v2529_v51 }
  0x91   : > { %1909 = vmatprep.subr.bf16.mxu1 %v2082_v20  ;;  %v1093_v38 = vadd.f32 %v1092_v30, %v1028_v23  ;;  %v1058_v23 = vunpack.c.l.bf16 %v2621_v18  ;;  %v2639_v30 = vld [vmem:[%s2485_s9 + $0xc8] sm:$0xff] }
  0x92   : > { %809 = vmatmul.mubr.bf16.vlgmr.msra.gmra.mrb[0].mxu0 %v1652_v37  ;;  %v1037_v37 = vunpack.c.h.bf16 %v2526_v50 }
  0x93   : > { %906 = vmatmul.mubr.bf16.vlgmr.msra.gmra.mrb[0].mxu1 %v1654_v41  ;;  %816 = vmatprep.mubr.bf16.mxu0 %v1657_v42  ;;  %v1039_v41 = vunpack.c.h.bf16 %v2523_v49  ;;  %v1098_v42 = vadd.f32 %v1097_v35, %v1032_v28  ;;  %v1094_v46 = vadd.f32 %v1093_v38, %v1029_v24  ;;  %v1044_v49 = vunpack.c.l.bf16 %v2542_v57  ;;  %v2634_v24 = vld [vmem:[%s2485_s9 + $0xc0] sm:$0xff] }
  0x94   : > { %913 = vmatprep.mubr.bf16.mxu1 %v1659_v45  ;;  %1878 = vmatpush3.bf16.msra.mxu0 %v2082_v20  ;;  %v1042_v45 = vunpack.c.l.bf16 %v2532_v52  ;;  %v1066_v34 = vunpack.c.l.bf16 %v2634_v24  ;;  %v1673_v35 = vcombine.high %v2621_v18, %v2625_v19 }
  0x95   : > { %1917 = vmatpush3.bf16.msra.mxu1 %v2082_v20  ;;  %1879 = vmatprep.subr.bf16.mxu0 %v2083_v29  ;;  %v1107_v48 = vadd.f32 %v1039_v41, %v1038_v40  ;;  %v2628_v20 = vld [vmem:[%s2485_s9 + $0xa8] sm:$0xff] }
  0x96   : > { %1910 = vmatprep.subr.bf16.mxu1 %v2083_v29  ;;  %1095 = vadd.xlane.f32.xlu1 %v1094_v46  ;;  %v1112_v2 = vadd.f32 %v1043_v54, %v1042_v45  ;;  %v1060_v27 = vunpack.c.l.bf16 %v2628_v20  ;;  %v1061_v28 = vunpack.c.h.bf16 %v2628_v20  ;;  %v2658_v45 = vld [vmem:[%s2485_s9 + $0xb8] sm:$0xff]  ;;  %v1069_v46 = vunpack.c.h.bf16 %v2639_v30 }
  0x97   : > { %v1108_v1 = vadd.f32 %v1107_v48, %v1040_v43  ;;  %v1054_v48 = vunpack.c.l.bf16 %v2553_v62  ;;  %v1055_v54 = vunpack.c.h.bf16 %v2553_v62 }
  0x98   : > { %v1113_v51 = vadd.f32 %v1112_v2, %v1044_v49  ;;  %1880 = vmatpush3.bf16.msra.mxu0 %v2083_v29  ;;  %v1057_v49 = vunpack.c.h.bf16 %v2559_v0  ;;  %v342_v2 = vld [vmem:[%s2485_s9 + $0xf0] sm:$0xff] }
  0x99   : > { %v1109_v50 = vadd.f32 %v1108_v1, %v1041_v44  ;;  %1918 = vmatpush3.bf16.msra.mxu1 %v2083_v29  ;;  %v1067_v29 = vunpack.c.h.bf16 %v2634_v24  ;;  %v2085_v44 = vld [vmem:[#allocation9 + $0x18] sm:$0xff]   ;;  %v1065_v1 = vunpack.c.h.bf16 %v2658_v45 }
  0x9a   : > { %817 = vmatmul.mubr.bf16.gmra.mrb[4].mxu0 %v1656_v55  ;;  %v1099_v55 = vadd.f32 %v1098_v42, %v1033_v31  ;;  %v2642_v31 = vld [vmem:[%s2485_s9 + $0xe0] sm:$0xff] }
  0x9b   : > { %914 = vmatmul.mubr.bf16.gmra.mrb[4].mxu1 %v1658_v56  ;;  %824 = vmatprep.mubr.bf16.mxu0 %v1661_v61  ;;  %v1045_v56 = vunpack.c.h.bf16 %v2542_v57  ;;  %v1104_v61 = vadd.f32 %v1103_v47, %v1037_v37  ;;  %v1068_v37 = vunpack.c.l.bf16 %v2639_v30  ;;  %v1074_v38 = vunpack.c.l.bf16 %v2642_v31 }
  0x9c   : > { %921 = vmatprep.mubr.bf16.mxu1 %v1663_v4  ;;  %v2084_v4 = vld [vmem:[#allocation9 + $0x10] sm:$0xff]   ;;  %1100 = vadd.xlane.f32.xlu1 %v1099_v55  ;;  %v1142_v42 = vadd.f32 %v1067_v29, %v1066_v34  ;;  %v1075_v43 = vunpack.c.h.bf16 %v2642_v31  ;;  %v1076_v47 = vunpack.c.l.bf16 %v2651_v39  ;;  %v1056_v55 = vunpack.c.l.bf16 %v2559_v0 }
  0x9d   : > { %1105 = vadd.xlane.f32.xlu0 %v1104_v61  ;;  %v1114_v25 = vadd.f32 %v1113_v51, %v1045_v56  ;;  %1881 = vmatprep.subr.bf16.mxu0 %v2084_v4  ;;  %v1127_v57 = vadd.f32 %v1055_v54, %v1054_v48  ;;  %v338_v56 = vld [vmem:[%s2485_s9 + $0xd0] sm:$0xff]  ;;  %v1064_v61 = vunpack.c.l.bf16 %v2658_v45  ;;  %v1078_v51 = vunpack.c.l.bf16 %v342_v2 }
  0x9e   : > { %1911 = vmatprep.subr.bf16.mxu1 %v2084_v4  ;;  %1882 = vmatpush3.bf16.msra.mxu0 %v2084_v4  ;;  %v1143_v53 = vadd.f32 %v1142_v42, %v1068_v37  ;;  %v1674_v34 = vcombine.low %v2628_v20, %v2658_v45  ;;  %v1681_v29 = vcombine.high %v2642_v31, %v342_v2  ;;  %v2086_v37 = vld [vmem:[#allocation9 + $0x20] sm:$0xff]  }
  0x9f   : > { %1919 = vmatpush3.bf16.msra.mxu1 %v2084_v4  ;;  %1883 = vmatprep.subr.bf16.mxu0 %v2085_v44 }
  0xa0   : > { %1110 = vadd.xlane.f32.xlu1 %v1109_v50  ;;  %1912 = vmatprep.subr.bf16.mxu1 %v2085_v44  ;;  %v1144_v11 = vadd.f32 %v1143_v53, %v1069_v46 }
  0xa1   : > { %1115 = vadd.xlane.f32.xlu0 %v1114_v25 }
  0xa2   : > { %825 = vmatmul.mubr.bf16.gmra.mrb[8].mxu0 %v1660_v5  ;;  %v1049_v5 = vunpack.c.h.bf16 %v2545_v58  ;;  %v1062_v58 = vunpack.c.l.bf16 %v2625_v19 }
  0xa3   : > { %922 = vmatmul.mubr.bf16.gmra.mrb[8].mxu1 %v1662_v6  ;;  %832 = vmatprep.mubr.bf16.mxu0 %v1665_v7  ;;  %v1117_v6 = vadd.f32 %v1047_v3, %v1046_v60  ;;  %v1052_v7 = vunpack.c.l.bf16 %v2556_v63  ;;  %v1077_v60 = vunpack.c.h.bf16 %v2651_v39  ;;  %v1128_v3 = vadd.f32 %v1127_v57, %v1056_v55 }
  0xa4   : > { %929 = vmatprep.mubr.bf16.mxu1 %v1667_v8  ;;  %v1059_v8 = vunpack.c.h.bf16 %v2621_v18  ;;  %1884 = vmatpush3.bf16.msra.mxu0 %v2085_v44  ;;  %v1677_v63 = vcombine.high %v2634_v24, %v338_v56  ;;  %v1676_v18 = vcombine.low %v2634_v24, %v338_v56  ;;  %v2087_v24 = vld [vmem:[#allocation9 + $0x28] sm:$0xff]  }
  0xa5   : > { %v1118_v26 = vadd.f32 %v1117_v6, %v1048_v10  ;;  %v1123_v32 = vadd.f32 %v1122_v22, %v1052_v7  ;;  %v1070_v10 = vunpack.c.l.bf16 %v338_v56  ;;  %1920 = vmatpush3.bf16.msra.mxu1 %v2085_v44  ;;  %v1129_v6 = vadd.f32 %v1128_v3, %v1057_v49  ;;  %1885 = vmatprep.subr.bf16.mxu0 %v2086_v37 }
  0xa6   : > { %v1132_v33 = vadd.f32 %v1059_v8, %v1058_v23  ;;  %v1079_v22 = vunpack.c.h.bf16 %v342_v2  ;;  %v343_v23 = vld [vmem:[%s2485_s9 + $0xf8] sm:$0xff]  ;;  %1913 = vmatprep.subr.bf16.mxu1 %v2086_v37 }
  0xa7   : > { %v1119_v36 = vadd.f32 %v1118_v26, %v1049_v5  ;;  %v1124_v40 = vadd.f32 %v1123_v32, %v1053_v21  ;;  %v1071_v5 = vunpack.c.h.bf16 %v338_v56 }
  0xa8   : > { %v1133_v41 = vadd.f32 %v1132_v33, %v1060_v27  ;;  %v1080_v27 = vunpack.c.l.bf16 %v343_v23  ;;  %1886 = vmatpush3.bf16.msra.mxu0 %v2086_v37 }
  0xa9   : > { %1125 = vadd.xlane.f32.xlu0 %v1124_v40  ;;  %1120 = vadd.xlane.f32.xlu1 %v1119_v36  ;;  %v1147_v21 = vadd.f32 %v1071_v5, %v1070_v10  ;;  %v1682_v36 = vcombine.low %v2651_v39, %v343_v23 }
  0xaa   : > { %833 = vmatmul.mubr.bf16.gmra.mrb[12].mxu0 %v1664_v9  ;;  %v1134_v52 = vadd.f32 %v1133_v41, %v1061_v28  ;;  %v1152_v9 = vadd.f32 %v1075_v43, %v1074_v38  ;;  %v1157_v28 = vadd.f32 %v1079_v22, %v1078_v51  ;;  %1921 = vmatpush3.bf16.msra.mxu1 %v2086_v37  ;;  %v2271_v38 = vmov 0.0  }
  0xab   : > { %930 = vmatmul.mubr.bf16.gmra.mrb[12].mxu1 %v1666_v12  ;;  %840 = vmatprep.mubr.bf16.mxu0 %v1669_v13  ;;  %v1063_v12 = vunpack.c.h.bf16 %v2625_v19  ;;  %v1675_v13 = vcombine.high %v2628_v20, %v2658_v45  ;;  %v1683_v20 = vcombine.high %v2651_v39, %v343_v23  ;;  %296 = vst.msk [vmem:[#allocation3] sm:$0xff] %vm295_vm0, %v2271_v38  ;;  %297 = vst.msk [vmem:[#allocation3 + $0x8] sm:$0xff] %vm295_vm0, %v2271_v38  ;;  %v2272_v41 = vmov 0  }
  0xac   : > { %937 = vmatprep.mubr.bf16.mxu1 %v1671_v14  ;;  %v339_v14 = vld [vmem:[%s2485_s9 + $0xd8] sm:$0xff]  ;;  %v1153_v17 = vadd.f32 %v1152_v9, %v1076_v47  ;;  %v1158_v33 = vadd.f32 %v1157_v28, %v1080_v27  ;;  %1887 = vmatprep.subr.bf16.mxu0 %v2087_v24  ;;  %298 = vst.msk [vmem:[#allocation3 + $0x10] sm:$0xff] %vm295_vm0, %v2271_v38  ;;  %299 = vst.msk [vmem:[#allocation3 + $0x18] sm:$0xff] %vm295_vm0, %v2271_v38 }
  0xad   : > { %v1137_v4 = vadd.f32 %v1063_v12, %v1062_v58  ;;  %v1072_v50 = vunpack.c.l.bf16 %v339_v14  ;;  %1135 = vadd.xlane.f32.xlu0 %v1134_v52  ;;  %v1073_v8 = vunpack.c.h.bf16 %v339_v14  ;;  %1130 = vadd.xlane.f32.xlu1 %v1129_v6  ;;  %v1679_v0 = vcombine.high %v2639_v30, %v339_v14  ;;  %300 = vst.msk [vmem:[#allocation3 + $0x20] sm:$0xff] %vm295_vm0, %v2271_v38 }
  0xae   : > { %v1154_v32 = vadd.f32 %v1153_v17, %v1077_v60  ;;  %v1678_v19 = vcombine.low %v2639_v30, %v339_v14  ;;  %1914 = vmatprep.subr.bf16.mxu1 %v2087_v24  ;;  %1888 = vmatpush3.bf16.msra.mxu0 %v2087_v24  ;;  %v2088_v30 = vld [vmem:[#allocation9 + $0x30] sm:$0xff]   ;;  %301 = vst.msk [vmem:[#allocation3 + $0x28] sm:$0xff] %vm295_vm0, %v2271_v38  ;;  %302 = vst.msk [vmem:[#allocation3 + $0x30] sm:$0xff] %vm295_vm0, %v2271_v38 }
  0xaf   : > { %v1138_v7 = vadd.f32 %v1137_v4, %v1064_v61  ;;  %v1148_v26 = vadd.f32 %v1147_v21, %v1072_v50  ;;  %1922 = vmatpush3.bf16.msra.mxu1 %v2087_v24  ;;  %1889 = vmatprep.subr.bf16.mxu0 %v2088_v30  ;;  %303 = vst.msk [vmem:[#allocation3 + $0x38] sm:$0xff] %vm295_vm0, %v2271_v38  ;;  %304 = vst.msk [vmem:[#allocation3 + $0x40] sm:$0xff] %vm295_vm0, %v2271_v38 }
  0xb0   : > { %1915 = vmatprep.subr.bf16.mxu1 %v2088_v30  ;;  %305 = vst.msk [vmem:[#allocation3 + $0x48] sm:$0xff] %vm295_vm0, %v2271_v38  ;;  %306 = vst.msk [vmem:[#allocation3 + $0x50] sm:$0xff] %vm295_vm0, %v2271_v38  ;;  %2017 = vset.pattern.permute.xlu1 %v2272_v41 }
  0xb1   : > { %v1139_v25 = vadd.f32 %v1138_v7, %v1065_v1  ;;  %1145 = vadd.xlane.f32.xlu0 %v1144_v11  ;;  %v1149_v62 = vadd.f32 %v1148_v26, %v1073_v8  ;;  %307 = vst.msk [vmem:[#allocation3 + $0x58] sm:$0xff] %vm295_vm0, %v2271_v38  ;;  %308 = vst.msk [vmem:[#allocation3 + $0x60] sm:$0xff] %vm295_vm0, %v2271_v38 }
  0xb2   : > { %841 = vmatmul.mubr.bf16.gmra.mrb[16].mxu0 %v1668_v15  ;;  %v1081_v15 = vunpack.c.h.bf16 %v343_v23  ;;  %309 = vst.msk [vmem:[#allocation3 + $0x68] sm:$0xff] %vm295_vm0, %v2271_v38  ;;  %310 = vst.msk [vmem:[#allocation3 + $0x70] sm:$0xff] %vm295_vm0, %v2271_v38  ;;  %v1002_v39 = vld [vmem:[#allocation3] sm:$0xff]  ;;  %2016 = vset.pattern.permute.xlu0 %v2272_v41  ;;  %v1003_v43 = vld [vmem:[#allocation3 + $0x8] sm:$0xff] }
  0xb3   : > { %938 = vmatmul.mubr.bf16.gmra.mrb[16].mxu1 %v1670_v16  ;;  %848 = vmatprep.mubr.bf16.mxu0 %v1673_v35  ;;  %v1680_v35 = vcombine.low %v2642_v31, %v342_v2  ;;  %v2089_v31 = vld [vmem:[#allocation9 + $0x38] sm:$0xff]   ;;  %311 = vst.msk [vmem:[#allocation3 + $0x78] sm:$0xff] %vm295_vm0, %v2271_v38  ;;  %v1004_v45 = vld [vmem:[#allocation3 + $0x10] sm:$0xff] }
  0xb4   : > { %945 = vmatprep.mubr.bf16.mxu1 %v1675_v13  ;;  %1140 = vadd.xlane.f32.xlu1 %v1139_v25  ;;  %v1159_v16 = vadd.f32 %v1158_v33, %v1081_v15  ;;  %v1006_v48 = vld [vmem:[#allocation3 + $0x20] sm:$0xff]  ;;  %v1005_v52 = vld [vmem:[#allocation3 + $0x18] sm:$0xff] }
  0xb5   : > { %1155 = vadd.xlane.f32.xlu0 %v1154_v32  ;;  %1890 = vmatpush3.bf16.msra.mxu0 %v2088_v30  ;;  %v1008_v49 = vld [vmem:[#allocation3 + $0x30] sm:$0xff]  ;;  %v1007_v12 = vld [vmem:[#allocation3 + $0x28] sm:$0xff] }
  0xb6   : > { %1923 = vmatpush3.bf16.msra.mxu1 %v2088_v30  ;;  %1891 = vmatprep.subr.bf16.mxu0 %v2089_v31  ;;  %v1010_v1 = vld [vmem:[#allocation3 + $0x40] sm:$0xff]  ;;  %v1009_v3 = vld [vmem:[#allocation3 + $0x38] sm:$0xff] }
  0xb7   : > { %1916 = vmatprep.subr.bf16.mxu1 %v2089_v31  ;;  %v1012_v11 = vld [vmem:[#allocation3 + $0x50] sm:$0xff]  ;;  %v1011_v6 = vld [vmem:[#allocation3 + $0x48] sm:$0xff] }
  0xb8   : > { %1150 = vadd.xlane.f32.xlu1 %v1149_v62  ;;  %v1014_v21 = vld [vmem:[#allocation3 + $0x60] sm:$0xff]  ;;  %v1013_v26 = vld [vmem:[#allocation3 + $0x58] sm:$0xff] }
  0xb9   : > { %1892 = vmatpush3.bf16.msra.mxu0 %v2089_v31  ;;  %v1016_v28 = vld [vmem:[#allocation3 + $0x70] sm:$0xff]  ;;  %v1015_v33 = vld [vmem:[#allocation3 + $0x68] sm:$0xff] }
  0xba   : > { %849 = vmatmul.mubr.bf16.gmra.mrb[20].mxu0 %v1672_v59  ;;  %1924 = vmatpush3.bf16.msra.mxu1 %v2089_v31 }
  0xbb   : > { %946 = vmatmul.mubr.bf16.gmra.mrb[20].mxu1 %v1674_v34  ;;  %856 = vmatprep.mubr.bf16.mxu0 %v1677_v63 }
  0xbc   : > { %953 = vmatprep.mubr.bf16.mxu1 %v1679_v0  ;;  %1160 = vadd.xlane.f32.xlu1 %v1159_v16 }
  0xc2   : > { %857 = vmatmul.mubr.bf16.gmra.mrb[24].mxu0 %v1676_v18 }
  0xc3   : > { %954 = vmatmul.mubr.bf16.gmra.mrb[24].mxu1 %v1678_v19  ;;  %864 = vmatprep.mubr.bf16.mxu0 %v1681_v29  ;;  %v1017_v19 = vld [vmem:[#allocation3 + $0x78] sm:$0xff] }
  0xc4   : > { %961 = vmatprep.mubr.bf16.mxu1 %v1683_v20 }
  0xca   : > { %865 = vmatmul.mubr.bf16.gmra.mrb[28].mxu0 %v1680_v35 }
  0xcb   : > { %962 = vmatmul.mubr.bf16.gmra.mrb[28].mxu1 %v1682_v36 }
 0x112   : > { %v1086_v40 = vpop.xlane.xlu0 %1085 }
 0x113   : > { %v1162_v42 = vadd.f32 %v1086_v40, %v1002_v39 }
 0x115   : > { %1179 = vst.msk [vmem:[#allocation3] sm:$0xff] %vm295_vm0, %v1162_v42 }
 0x11a   : > { %v1091_v44 = vpop.xlane.xlu0 %1090 }
 0x11b   : > { %v1163_v46 = vadd.f32 %v1091_v44, %v1003_v43 }
 0x11c   : > { %v1238_v57 = vld [vmem:[#allocation3] sm:$0xff] }
 0x11d   : > { %1180 = vst.msk [vmem:[#allocation3 + $0x8] sm:$0xff] %vm295_vm0, %v1163_v46  ;;  %1257 = vperm.xlu0 %2016, %v1238_v57  }
 0x123   : > { %v1096_v47 = vpop.xlane.xlu1 %1095 }
 0x124   : > { %v1164_v54 = vadd.f32 %v1096_v47, %v1004_v45  ;;  %v1239_v60 = vld [vmem:[#allocation3 + $0x8] sm:$0xff] }
 0x125   : > { %1262 = vperm.xlu1 %2017, %v1239_v60  }
 0x126   : > { %1181 = vst.msk [vmem:[#allocation3 + $0x10] sm:$0xff] %vm295_vm0, %v1164_v54 }
 0x129   : > { %v1101_v55 = vpop.xlane.xlu1 %1100 }
 0x12a   : > { %v1106_v53 = vpop.xlane.xlu0 %1105  ;;  %v1165_v58 = vadd.f32 %v1101_v55, %v1005_v52 }
 0x12b   : > { %v1166_v9 = vadd.f32 %v1106_v53, %v1006_v48 }
 0x12c   : > { %1182 = vst.msk [vmem:[#allocation3 + $0x18] sm:$0xff] %vm295_vm0, %v1165_v58 }
 0x12d   : > { %1183 = vst.msk [vmem:[#allocation3 + $0x20] sm:$0xff] %vm295_vm0, %v1166_v9  ;;  %v1111_v61 = vpop.xlane.xlu1 %1110  ;;  %v1240_v2 = vld [vmem:[#allocation3 + $0x10] sm:$0xff] }
 0x12e   : > { %v1116_v13 = vpop.xlane.xlu0 %1115  ;;  %v1167_v14 = vadd.f32 %v1111_v61, %v1007_v12  ;;  %1267 = vperm.xlu1 %2017, %v1240_v2  }
 0x12f   : > { %v1168_v56 = vadd.f32 %v1116_v13, %v1008_v49 }
 0x130   : > { %1184 = vst.msk [vmem:[#allocation3 + $0x28] sm:$0xff] %vm295_vm0, %v1167_v14 }
 0x131   : > { %1185 = vst.msk [vmem:[#allocation3 + $0x30] sm:$0xff] %vm295_vm0, %v1168_v56 }
 0x133   : > { %v1241_v50 = vld [vmem:[#allocation3 + $0x18] sm:$0xff] }
 0x134   : > { %1272 = vperm.xlu1 %2017, %v1241_v50   ;;  %v1242_v8 = vld [vmem:[#allocation3 + $0x20] sm:$0xff] }
 0x136   : > { %v1126_v4 = vpop.xlane.xlu0 %1125  ;;  %v1121_v5 = vpop.xlane.xlu1 %1120 }
 0x137   : > { %v1170_v10 = vadd.f32 %v1126_v4, %v1010_v1  ;;  %v1169_v17 = vadd.f32 %v1121_v5, %v1009_v3  ;;  %v1243_v62 = vld [vmem:[#allocation3 + $0x28] sm:$0xff] }
 0x138   : > { %1277 = vperm.xlu1 %2017, %v1242_v8   ;;  %v1244_v16 = vld [vmem:[#allocation3 + $0x30] sm:$0xff] }
 0x139   : > { %1187 = vst.msk [vmem:[#allocation3 + $0x40] sm:$0xff] %vm295_vm0, %v1170_v10  ;;  %1186 = vst.msk [vmem:[#allocation3 + $0x38] sm:$0xff] %vm295_vm0, %v1169_v17 }
 0x13a   : > { %v1136_v51 = vpop.xlane.xlu0 %1135  ;;  %v1131_v22 = vpop.xlane.xlu1 %1130 }
 0x13b   : > { %v1172_v7 = vadd.f32 %v1136_v51, %v1012_v11  ;;  %v1171_v23 = vadd.f32 %v1131_v22, %v1011_v6 }
 0x13c   : > { %1282 = vperm.xlu1 %2017, %v1243_v62  }
 0x13d   : > { %1189 = vst.msk [vmem:[#allocation3 + $0x50] sm:$0xff] %vm295_vm0, %v1172_v7  ;;  %1188 = vst.msk [vmem:[#allocation3 + $0x48] sm:$0xff] %vm295_vm0, %v1171_v23 }
 0x13e   : > { %v1146_v25 = vpop.xlane.xlu0 %1145 }
 0x13f   : > { %v1174_v27 = vadd.f32 %v1146_v25, %v1014_v21 }
 0x140   : > { %1287 = vperm.xlu1 %2017, %v1244_v16   ;;  %v1245_v35 = vld [vmem:[#allocation3 + $0x38] sm:$0xff]  ;;  %v1246_v37 = vld [vmem:[#allocation3 + $0x40] sm:$0xff] }
 0x141   : > { %v1141_v32 = vpop.xlane.xlu1 %1140  ;;  %1191 = vst.msk [vmem:[#allocation3 + $0x60] sm:$0xff] %vm295_vm0, %v1174_v27 }
 0x142   : > { %v1173_v59 = vadd.f32 %v1141_v32, %v1013_v26  ;;  %v1156_v15 = vpop.xlane.xlu0 %1155 }
 0x143   : > { %v1176_v34 = vadd.f32 %v1156_v15, %v1016_v28 }
 0x144   : > { %1190 = vst.msk [vmem:[#allocation3 + $0x58] sm:$0xff] %vm295_vm0, %v1173_v59  ;;  %v1247_v18 = vld [vmem:[#allocation3 + $0x48] sm:$0xff]  ;;  %1292 = vperm.xlu1 %2017, %v1245_v35   ;;  %v1248_v30 = vld [vmem:[#allocation3 + $0x50] sm:$0xff] }
 0x145   : > { %v1151_v63 = vpop.xlane.xlu1 %1150  ;;  %1193 = vst.msk [vmem:[#allocation3 + $0x70] sm:$0xff] %vm295_vm0, %v1176_v34  ;;  %1302 = vperm.xlu0 %2016, %v1247_v18  }
 0x146   : > { %v1175_v0 = vadd.f32 %v1151_v63, %v1015_v33 }
 0x148   : > { %1192 = vst.msk [vmem:[#allocation3 + $0x68] sm:$0xff] %vm295_vm0, %v1175_v0  ;;  %1297 = vperm.xlu1 %2017, %v1246_v37   ;;  %v1250_v38 = vld [vmem:[#allocation3 + $0x60] sm:$0xff] }
 0x149   : > { %v1161_v29 = vpop.xlane.xlu1 %1160 }
 0x14a   : > { %v1177_v20 = vadd.f32 %v1161_v29, %v1017_v19 }
 0x14b   : > { %v1249_v36 = vld [vmem:[#allocation3 + $0x58] sm:$0xff] }
 0x14c   : > { %1194 = vst.msk [vmem:[#allocation3 + $0x78] sm:$0xff] %vm295_vm0, %v1177_v20  ;;  %1312 = vperm.xlu0 %2016, %v1249_v36   ;;  %1307 = vperm.xlu1 %2017, %v1248_v30   ;;  %v1252_v39 = vld [vmem:[#allocation3 + $0x70] sm:$0xff] }
 0x14f   : > { %v1251_v24 = vld [vmem:[#allocation3 + $0x68] sm:$0xff] }
 0x150   : > { %1322 = vperm.xlu0 %2016, %v1251_v24   ;;  %1317 = vperm.xlu1 %2017, %v1250_v38  }
 0x153   : > { %v1253_v31 = vld [vmem:[#allocation3 + $0x78] sm:$0xff] }
 0x154   : > { %1332 = vperm.xlu0 %2016, %v1253_v31   ;;  %1327 = vperm.xlu1 %2017, %v1252_v39  }
 0x165   : > { %v1749_v40 = vpop.f32.mrb[0].mxu0 }
 0x166   : > { %v1813_v41 = vpop.f32.mrb[0].mxu1  ;;  %v1750_v42 = vpop.f32.mrb[1].mxu0 }
 0x167   : > { %v1751_v43 = vadd.f32 %v1750_v42, %v1749_v40  ;;  %v1814_v44 = vpop.f32.mrb[1].mxu1  ;;  %v1752_v45 = vpop.f32.mrb[2].mxu0 }
 0x168   : > { %v1815_v46 = vadd.f32 %v1814_v44, %v1813_v41  ;;  %v1816_v47 = vpop.f32.mrb[2].mxu1  ;;  %v1753_v48 = vpop.f32.mrb[3].mxu0 }
 0x169   : > { %v1754_v54 = vadd.f32 %v1753_v48, %v1752_v45  ;;  %v1817_v52 = vpop.f32.mrb[3].mxu1 }
 0x16a   : > { %v908_v53 = vadd.f32 %v1815_v46, %v1751_v43  ;;  %v1818_v9 = vadd.f32 %v1817_v52, %v1816_v47 }
 0x16c   : > { %v911_v55 = vadd.f32 %v1818_v9, %v1754_v54 }
 0x16d   : > { %v1755_v49 = vpop.f32.mrb[4].mxu0 }
 0x16e   : > { %v1819_v57 = vpop.f32.mrb[4].mxu1  ;;  %v1756_v58 = vpop.f32.mrb[5].mxu0  ;;  %v1214_v12 = vpack.c.bf16 %v911_v55, %v908_v53 }
 0x16f   : > { %v1757_v13 = vadd.f32 %v1756_v58, %v1755_v49  ;;  %v1820_v56 = vpop.f32.mrb[5].mxu1  ;;  %v1758_v60 = vpop.f32.mrb[6].mxu0 }
 0x170   : > { %v1821_v61 = vadd.f32 %v1820_v56, %v1819_v57  ;;  %v1822_v1 = vpop.f32.mrb[6].mxu1  ;;  %1893 = vmatprep.mubr.bf16.mxu0 %v1214_v12  ;;  %v1759_v14 = vpop.f32.mrb[7].mxu0 }
 0x171   : > { %v1760_v2 = vadd.f32 %v1759_v14, %v1758_v60  ;;  %v1823_v3 = vpop.f32.mrb[7].mxu1 }
 0x172   : > { %v916_v4 = vadd.f32 %v1821_v61, %v1757_v13  ;;  %v1824_v10 = vadd.f32 %v1823_v3, %v1822_v1 }
 0x174   : > { %v919_v5 = vadd.f32 %v1824_v10, %v1760_v2 }
 0x175   : > { %v1761_v11 = vpop.f32.mrb[8].mxu0 }
 0x176   : > { %v1215_v17 = vpack.c.bf16 %v919_v5, %v916_v4  ;;  %v1825_v50 = vpop.f32.mrb[8].mxu1  ;;  %v1762_v51 = vpop.f32.mrb[9].mxu0 }
 0x177   : > { %v1763_v6 = vadd.f32 %v1762_v51, %v1761_v11  ;;  %v1826_v7 = vpop.f32.mrb[9].mxu1  ;;  %v1764_v21 = vpop.f32.mrb[10].mxu0 }
 0x178   : > { %v1827_v22 = vadd.f32 %v1826_v7, %v1825_v50  ;;  %v1828_v23 = vpop.f32.mrb[10].mxu1  ;;  %1894 = vmatmul.mubr.bf16.vlgmr.msra.gmra.mrb[32].mxu0 %v1215_v17  ;;  %v1765_v8 = vpop.f32.mrb[11].mxu0 }
 0x179   : > { %v1766_v25 = vadd.f32 %v1765_v8, %v1764_v21  ;;  %v1829_v26 = vpop.f32.mrb[11].mxu1 }
 0x17a   : > { %v924_v27 = vadd.f32 %v1827_v22, %v1763_v6  ;;  %v1830_v28 = vadd.f32 %v1829_v26, %v1828_v23 }
 0x17c   : > { %v927_v32 = vadd.f32 %v1830_v28, %v1766_v25 }
 0x17d   : > { %v1767_v59 = vpop.f32.mrb[12].mxu0 }
 0x17e   : > { %v1831_v62 = vpop.f32.mrb[12].mxu1  ;;  %v1768_v15 = vpop.f32.mrb[13].mxu0  ;;  %v1216_v33 = vpack.c.bf16 %v927_v32, %v924_v27 }
 0x17f   : > { %v1769_v34 = vadd.f32 %v1768_v15, %v1767_v59  ;;  %v1832_v63 = vpop.f32.mrb[13].mxu1  ;;  %v1770_v0 = vpop.f32.mrb[14].mxu0 }
 0x180   : > { %v1833_v16 = vadd.f32 %v1832_v63, %v1831_v62  ;;  %v1834_v18 = vpop.f32.mrb[14].mxu1  ;;  %1897 = vmatprep.mubr.bf16.mxu0 %v1216_v33  ;;  %v1771_v19 = vpop.f32.mrb[15].mxu0 }
 0x181   : > { %v1772_v29 = vadd.f32 %v1771_v19, %v1770_v0  ;;  %v1835_v20 = vpop.f32.mrb[15].mxu1 }
 0x182   : > { %v932_v35 = vadd.f32 %v1833_v16, %v1769_v34  ;;  %v1836_v36 = vadd.f32 %v1835_v20, %v1834_v18 }
 0x184   : > { %v935_v37 = vadd.f32 %v1836_v36, %v1772_v29 }
 0x185   : > { %v1773_v24 = vpop.f32.mrb[16].mxu0 }
 0x186   : > { %v1837_v30 = vpop.f32.mrb[16].mxu1  ;;  %v1774_v31 = vpop.f32.mrb[17].mxu0  ;;  %v1217_v38 = vpack.c.bf16 %v935_v37, %v932_v35 }
 0x187   : > { %v1775_v39 = vadd.f32 %v1774_v31, %v1773_v24  ;;  %v1838_v40 = vpop.f32.mrb[17].mxu1  ;;  %v1776_v41 = vpop.f32.mrb[18].mxu0  ;;  %v2742_v24 = vld [vmem:[%s2837_s3] ss:$0 sm:$0xff] }
 0x188   : > { %v1839_v42 = vadd.f32 %v1838_v40, %v1837_v30  ;;  %v1840_v43 = vpop.f32.mrb[18].mxu1  ;;  %1898 = vmatmul.mubr.bf16.gmra.mrb[36].mxu0 %v1217_v38  ;;  %v1777_v44 = vpop.f32.mrb[19].mxu0 }
 0x189   : > { %v1778_v45 = vadd.f32 %v1777_v44, %v1776_v41  ;;  %v1841_v46 = vpop.f32.mrb[19].mxu1 }
 0x18a   : > { %v940_v47 = vadd.f32 %v1839_v42, %v1775_v39  ;;  %v1842_v48 = vadd.f32 %v1841_v46, %v1840_v43 }
 0x18c   : > { %v943_v54 = vadd.f32 %v1842_v48, %v1778_v45 }
 0x18d   : > { %v1779_v52 = vpop.f32.mrb[20].mxu0 }
 0x18e   : > { %v1843_v53 = vpop.f32.mrb[20].mxu1  ;;  %v1780_v9 = vpop.f32.mrb[21].mxu0  ;;  %v1218_v55 = vpack.c.bf16 %v943_v54, %v940_v47 }
 0x18f   : > { %v1781_v49 = vadd.f32 %v1780_v9, %v1779_v52  ;;  %v1844_v57 = vpop.f32.mrb[21].mxu1  ;;  %v1782_v58 = vpop.f32.mrb[22].mxu0 }
 0x190   : > { %v1845_v12 = vadd.f32 %v1844_v57, %v1843_v53  ;;  %v1846_v13 = vpop.f32.mrb[22].mxu1  ;;  %1901 = vmatprep.mubr.bf16.mxu1 %v1218_v55  ;;  %v1783_v56 = vpop.f32.mrb[23].mxu0 }
 0x191   : > { %v1784_v60 = vadd.f32 %v1783_v56, %v1782_v58  ;;  %v1847_v61 = vpop.f32.mrb[23].mxu1 }
 0x192   : > { %v948_v1 = vadd.f32 %v1845_v12, %v1781_v49  ;;  %v1848_v14 = vadd.f32 %v1847_v61, %v1846_v13 }
 0x194   : > { %v951_v2 = vadd.f32 %v1848_v14, %v1784_v60 }
 0x195   : > { %v1785_v3 = vpop.f32.mrb[24].mxu0 }
 0x196   : > { %v1219_v4 = vpack.c.bf16 %v951_v2, %v948_v1  ;;  %v1849_v10 = vpop.f32.mrb[24].mxu1  ;;  %v1786_v5 = vpop.f32.mrb[25].mxu0 }
 0x197   : > { %v1787_v11 = vadd.f32 %v1786_v5, %v1785_v3  ;;  %v1850_v17 = vpop.f32.mrb[25].mxu1  ;;  %v1788_v50 = vpop.f32.mrb[26].mxu0 }
 0x198   : > { %v1851_v51 = vadd.f32 %v1850_v17, %v1849_v10  ;;  %v1852_v6 = vpop.f32.mrb[26].mxu1  ;;  %1902 = vmatmul.mubr.bf16.vlgmr.msra.gmra.mrb[32].mxu1 %v1219_v4  ;;  %v1789_v7 = vpop.f32.mrb[27].mxu0 }
 0x199   : > { %v1790_v21 = vadd.f32 %v1789_v7, %v1788_v50  ;;  %v1853_v22 = vpop.f32.mrb[27].mxu1 }
 0x19a   : > { %v956_v23 = vadd.f32 %v1851_v51, %v1787_v11  ;;  %v1854_v8 = vadd.f32 %v1853_v22, %v1852_v6 }
 0x19c   : > { %v959_v25 = vadd.f32 %v1854_v8, %v1790_v21  ;;  %v1258_v30 = vpop.permute.xlu0 %1257 }
 0x19d   : > { %v1791_v26 = vpop.f32.mrb[28].mxu0  ;;  %v1341_v39 = vmul.f32 %v2742_v24, %v1258_v30 }
 0x19e   : > { %v1855_v27 = vpop.f32.mrb[28].mxu1  ;;  %v1792_v28 = vpop.f32.mrb[29].mxu0  ;;  %v1220_v32 = vpack.c.bf16 %v959_v25, %v956_v23 }
 0x19f   : > { %v1793_v59 = vadd.f32 %v1792_v28, %v1791_v26  ;;  %v1856_v62 = vpop.f32.mrb[29].mxu1  ;;  %v1794_v15 = vpop.f32.mrb[30].mxu0 }
 0x1a0   : > { %v1857_v33 = vadd.f32 %v1856_v62, %v1855_v27  ;;  %v1858_v34 = vpop.f32.mrb[30].mxu1  ;;  %1905 = vmatprep.mubr.bf16.mxu1 %v1220_v32  ;;  %v1795_v63 = vpop.f32.mrb[31].mxu0 }
 0x1a1   : > { %v1796_v0 = vadd.f32 %v1795_v63, %v1794_v15  ;;  %v1859_v16 = vpop.f32.mrb[31].mxu1 }
 0x1a2   : > { %v964_v18 = vadd.f32 %v1857_v33, %v1793_v59  ;;  %v1860_v19 = vadd.f32 %v1859_v16, %v1858_v34 }
 0x1a4   : > { %v967_v29 = vadd.f32 %v1860_v19, %v1796_v0  ;;  %v1263_v35 = vpop.permute.xlu1 %1262 }
 0x1a5   : > { %v1342_v41 = vmul.f32 %v2742_v24, %v1263_v35 }
 0x1a6   : > { %v1221_v20 = vpack.c.bf16 %v967_v29, %v964_v18 }
 0x1a8   : > { %1906 = vmatmul.mubr.bf16.gmra.mrb[36].mxu1 %v1221_v20 }
 0x1ad   : > { %v1268_v36 = vpop.permute.xlu1 %1267 }
 0x1ae   : > { %v1343_v31 = vmul.f32 %v2742_v24, %v1268_v36 }
 0x1b3   : > { %v1273_v37 = vpop.permute.xlu1 %1272 }
 0x1b4   : > { %v1344_v40 = vmul.f32 %v2742_v24, %v1273_v37 }
 0x1b7   : > { %v1278_v38 = vpop.permute.xlu1 %1277 }
 0x1b8   : > { %v1345_v55 = vmul.f32 %v2742_v24, %v1278_v38 }
 0x1bb   : > { %v1283_v54 = vpop.permute.xlu1 %1282 }
 0x1bc   : > { %v1346_v56 = vmul.f32 %v2742_v24, %v1283_v54 }
 0x1bf   : > { %v1288_v53 = vpop.permute.xlu1 %1287 }
 0x1c0   : > { %v1347_v9 = vmul.f32 %v2742_v24, %v1288_v53 }
 0x1c3   : > { %v1293_v49 = vpop.permute.xlu1 %1292 }
 0x1c4   : > { %v1348_v58 = vmul.f32 %v2742_v24, %v1293_v49  ;;  %v1303_v4 = vpop.permute.xlu0 %1302 }
 0x1c5   : > { %v1350_v51 = vmul.f32 %v2742_v24, %v1303_v4 }
 0x1c7   : > { %v1298_v3 = vpop.permute.xlu1 %1297 }
 0x1c8   : > { %v1349_v50 = vmul.f32 %v2742_v24, %v1298_v3 }
 0x1cb   : > { %v1308_v10 = vpop.permute.xlu1 %1307  ;;  %v1313_v5 = vpop.permute.xlu0 %1312 }
 0x1cc   : > { %v1351_v11 = vmul.f32 %v2742_v24, %v1308_v10  ;;  %v1352_v17 = vmul.f32 %v2742_v24, %v1313_v5 }
 0x1cf   : > { %v1318_v27 = vpop.permute.xlu1 %1317  ;;  %v1323_v28 = vpop.permute.xlu0 %1322 }
 0x1d0   : > { %v1353_v15 = vmul.f32 %v2742_v24, %v1318_v27  ;;  %v1354_v16 = vmul.f32 %v2742_v24, %v1323_v28 }
 0x1d3   : > { %v1328_v32 = vpop.permute.xlu1 %1327  ;;  %v1333_v59 = vpop.permute.xlu0 %1332 }
 0x1d4   : > { %v1355_v62 = vmul.f32 %v2742_v24, %v1328_v32  ;;  %v1356_v34 = vmul.f32 %v2742_v24, %v1333_v59 }
 0x24b   : > { %v1895_v42 = vpop.f32.mrb[32].mxu0 }
 0x24c   : > { %v1448_v43 = vadd.f32 %v1895_v42, %v1343_v31  ;;  %v1439_v44 = vpop.f32.mrb[33].mxu0 }
 0x24d   : > { %v1440_v45 = vadd.f32 %v1439_v44, %v1341_v39  ;;  %v1896_v46 = vpop.f32.mrb[34].mxu0 }
 0x24e   : > { %1504 = vst [vmem:[%s2749_s12 + $0x10] sm:$0xff] %v1448_v43  ;;  %v1451_v47 = vadd.f32 %v1896_v46, %v1344_v40  ;;  %v1442_v48 = vpop.f32.mrb[35].mxu0 }
 0x24f   : > { %1502 = vst [vmem:[%s2749_s12] sm:$0xff] %v1440_v45  ;;  %v1443_v52 = vadd.f32 %v1442_v48, %v1342_v41 }
 0x250   : > { %1505 = vst [vmem:[%s2749_s12 + $0x18] sm:$0xff] %v1451_v47 }
 0x251   : > { %1503 = vst [vmem:[%s2749_s12 + $0x8] sm:$0xff] %v1443_v52 }
 0x25b   : > { %v1899_v57 = vpop.f32.mrb[36].mxu0 }
 0x25c   : > { %v1464_v12 = vadd.f32 %v1899_v57, %v1347_v9  ;;  %v1455_v13 = vpop.f32.mrb[37].mxu0 }
 0x25d   : > { %v1456_v60 = vadd.f32 %v1455_v13, %v1345_v55  ;;  %v1900_v61 = vpop.f32.mrb[38].mxu0 }
 0x25e   : > { %1508 = vst [vmem:[%s2749_s12 + $0x30] sm:$0xff] %v1464_v12  ;;  %v1467_v1 = vadd.f32 %v1900_v61, %v1348_v58  ;;  %v1458_v14 = vpop.f32.mrb[39].mxu0 }
 0x25f   : > { %1506 = vst [vmem:[%s2749_s12 + $0x20] sm:$0xff] %v1456_v60  ;;  %v1459_v2 = vadd.f32 %v1458_v14, %v1346_v56 }
 0x260   : > { %1509 = vst [vmem:[%s2749_s12 + $0x38] sm:$0xff] %v1467_v1 }
 0x261   : > { %1507 = vst [vmem:[%s2749_s12 + $0x28] sm:$0xff] %v1459_v2 }
 0x26b   : > { %v1903_v6 = vpop.f32.mrb[32].mxu1 }
 0x26c   : > { %v1480_v7 = vadd.f32 %v1903_v6, %v1351_v11  ;;  %v1471_v21 = vpop.f32.mrb[33].mxu1 }
 0x26d   : > { %v1472_v22 = vadd.f32 %v1471_v21, %v1349_v50  ;;  %v1904_v23 = vpop.f32.mrb[34].mxu1 }
 0x26e   : > { %1512 = vst [vmem:[%s2749_s12 + $0x50] sm:$0xff] %v1480_v7  ;;  %v1483_v8 = vadd.f32 %v1904_v23, %v1352_v17  ;;  %v1474_v25 = vpop.f32.mrb[35].mxu1 }
 0x26f   : > { %1510 = vst [vmem:[%s2749_s12 + $0x40] sm:$0xff] %v1472_v22  ;;  %v1475_v26 = vadd.f32 %v1474_v25, %v1350_v51 }
 0x270   : > { %1513 = vst [vmem:[%s2749_s12 + $0x58] sm:$0xff] %v1483_v8 }
 0x271   : > { %1511 = vst [vmem:[%s2749_s12 + $0x48] sm:$0xff] %v1475_v26 }
 0x27b   : > { %v1907_v33 = vpop.f32.mrb[36].mxu1 }
 0x27c   : > { %v1496_v63 = vadd.f32 %v1907_v33, %v1355_v62  ;;  %v1487_v0 = vpop.f32.mrb[37].mxu1 }
 0x27d   : > { %v1488_v18 = vadd.f32 %v1487_v0, %v1353_v15  ;;  %v1908_v19 = vpop.f32.mrb[38].mxu1 }
 0x27e   : > { %1516 = vst [vmem:[%s2749_s12 + $0x70] sm:$0xff] %v1496_v63  ;;  %v1499_v29 = vadd.f32 %v1908_v19, %v1356_v34  ;;  %v1490_v20 = vpop.f32.mrb[39].mxu1 }
 0x27f   : > { %1514 = vst [vmem:[%s2749_s12 + $0x60] sm:$0xff] %v1488_v18  ;;  %v1491_v35 = vadd.f32 %v1490_v20, %v1354_v16 }
 0x280   : > { %1517 = vst [vmem:[%s2749_s12 + $0x78] sm:$0xff] %v1499_v29 }
 0x281   : > { %1515 = vst [vmem:[%s2749_s12 + $0x68] sm:$0xff] %v1491_v35 }
 0x282   : > { %2189 = shalt.err (!%p2186_p5)
}
 0x283   : > { %s2190_s10 = scalar_lea.hbm %s2781_s24, 2048  ;;  %s2194_s25 = scalar_lea.hbm %s2838_s4, 8192 }
 0x284   : > { %p2191_p9 = scmp.ne.s32.totalorder %s2781_s24, %s2190_s10  ;;  %p2195_p3 = scmp.lt.u32.totalorder %s2781_s24, %s2838_s4 }
 0x285   : > { %p2196_p7 = scmp.lt.u32.totalorder %s2194_s25, %s2190_s10  ;;  %p2198_p1 = scmp.lt.u32.totalorder %s2190_s10, %s2781_s24 }
 0x286   : > { %p2192_p12 = pnand %p2191_p9, %p2426_p8 }
 0x287   : > { %p2197_p10 = por %p2196_p7, %p2195_p3 }
 0x288   : > { %p2193_p11 = pneg %p2192_p12 }
 0x289   : > { %p2199_p2 = por %p2198_p1, %p2197_p10 }
 0x28b   : > { %p2200_p4 = pnand %p2199_p2, %p2193_p11 }
 0x28d   : > { %2203 = shalt.err (!%p2200_p4)
}
 0x28e   : > { %s2274_s13 = smov 128   ;;  %s2275_s14 = smov 8  }
 0x28f   : > { %1935 = dma.vmem_to_hbm [thread:$0]  (%p2426_p8), %s2783_s29, 2048, %s2781_s24, %s1519_s18, %s2274_s13, %s2274_s13, %s2275_s14  }
 0x290 PF: > { %p1957_p6 = scmp.ge.s32.totalorder %s2262_s20, 2  ;;  %s1547_s11 = sand.u32 1, %s2242_s15  }
 0x291   : > { %p2855_p13 = scmp.ne.s32.totalorder %s2846_s26, 0  ;;  %s1548_s7 = scalar_lea.sflag [#allocation6], %s1547_s11 }
 0x293   : > { %p1949_p0 = pnand %p1957_p6, %p2855_p13 }
 0x295   : > { %2237 = dma.done.wait (!%p1949_p0), %s1548_s7, 2048  }
 0x296   : > { %2239 = vsyncadd (!%p1949_p0), %s1548_s7, 4294965248  ;;  %s21_s20 = sadd.s32 1, %s2262_s20   ;;  %s2856_s15 = smov %s2246_s16 }
 0x297   : > { %p18_p5 = scmp.ge.s32.totalorder %s21_s20, 6   ;;  %s2857_s16 = smov %s2250_s17 }
 0x298   : > { %s2858_s17 = smov %s2435_s22  ;;  %s2859_s18 = smov %s2258_s19 }
 0x299   : > { %s2860_s19 = smov %s2862_s5  ;;  %20 = sbr.rel (!%p18_p5) target bundleno = 7 (0x7), region = 98 }
 0x2a0   :  { %1553 = vsyncpa [#allocation5], 1 }
 0x2a1   :  { %1555 = vsyncpa [#allocation5 + $0x1], 1 }
 0x2a2   :  { %1556 = vsyncpa [#allocation8], 1 }
 0x2a3   :  { %1557 = vsyncpa [#allocation6], 1 }
 0x2a4   :  { %1559 = vsyncpa [#allocation6 + $0x1], 1 }

</bundles_post_ra>
